<compile_context>
chip_gen: v6e
topology: v6e:2x2x1
jax: 0.10.0
libtpu: 0.0.40
codegen_flags: <defaults>
</compile_context>

<pallas_src>
import numpy as np
import jax
import jax.numpy as jnp
from jax import lax
from jax.experimental import pallas as pl
from jax.experimental.pallas import tpu as pltpu

# Fixed dims implied by the PyTorch module (fc expects 320 = 20*4*4 -> 28x28 input).
H0 = W0 = 28          # input spatial
K = 5                 # conv kernel size
C1 = 10               # conv1 out channels
H1 = W1 = H0 - K + 1  # 24 conv1 output spatial
P1 = H1 // 2          # 12 pooled
C2 = 20               # conv2 out channels
H2 = W2 = P1 - K + 1  # 8  conv2 output spatial
P2 = H2 // 2          # 4  pooled
NCLASS = 10
FLAT = C2 * P2 * P2   # 320


# ------------------------------ fused kernel ------------------------------
# One grid step == one image. All weights live in VMEM (constant index maps),
# all intermediates live in VMEM scratch.
def fused_net_kernel(x_ref, m1_ref, b1_ref, m2_ref, b2_ref, fcw_ref, fcb_ref,
                     o_ref, s_wpool1, s_act1, s_wpool2, s_flat):
    x = x_ref[0]                                             # (28, 28)

    # ---- conv1: 5 banded matmuls, output lanes = ow*C1 + co  -> (24, 240) ----
    y1 = jnp.dot(x[0:H1, :], m1_ref[0], preferred_element_type=jnp.float32)
    for i in range(1, K):
        y1 = y1 + jnp.dot(x[i:i + H1, :], m1_ref[i],
                          preferred_element_type=jnp.float32)
    y1 = y1 + b1_ref[...]

    # ---- maxpool 2x2 + relu (stage 1), fused epilogue in VMEM ----
    # pool along W: max of adjacent 10-wide lane blocks -> (24, 120)
    for q in range(P1):
        a = y1[:, (2 * q) * C1:(2 * q) * C1 + C1]
        b = y1[:, (2 * q + 1) * C1:(2 * q + 1) * C1 + C1]
        s_wpool1[:, q * C1:(q + 1) * C1] = jnp.maximum(a, b)
    # pool along H: max of adjacent rows, then ReLU -> (12, 120)
    for p in range(P1):
        r = jnp.maximum(s_wpool1[2 * p:2 * p + 1, :],
                        s_wpool1[2 * p + 1:2 * p + 2, :])
        s_act1[p:p + 1, :] = jnp.maximum(r, 0.0)

    # ---- conv2: 5 banded matmuls on the (12, 120) activation -> (8, 160) ----
    y2 = jnp.dot(s_act1[0:H2, :], m2_ref[0], preferred_element_type=jnp.float32)
    for i in range(1, K):
        y2 = y2 + jnp.dot(s_act1[i:i + H2, :], m2_ref[i],
                          preferred_element_type=jnp.float32)
    y2 = y2 + b2_ref[...]

    # ---- maxpool 2x2 + relu (stage 2), written directly in flattened (h,w,c) ----
    for q in range(P2):
        a = y2[:, (2 * q) * C2:(2 * q) * C2 + C2]
        b = y2[:, (2 * q + 1) * C2:(2 * q + 1) * C2 + C2]
        s_wpool2[:, q * C2:(q + 1) * C2] = jnp.maximum(a, b)
    row_w = P2 * C2                                           # 80
    for p in range(P2):
        r = jnp.maximum(s_wpool2[2 * p:2 * p + 1, :],
                        s_wpool2[2 * p + 1:2 * p + 2, :])
        s_flat[0:1, p * row_w:(p + 1) * row_w] = jnp.maximum(r, 0.0)

    # ---- fc (weight pre-permuted to (h,w,c) flatten order) + log_softmax ----
    logits = jnp.dot(s_flat[...], fcw_ref[...],
                     preferred_element_type=jnp.float32) + fcb_ref[...]
    m = jnp.max(logits, axis=-1, keepdims=True)
    z = logits - m
    lse = jnp.log(jnp.sum(jnp.exp(z), axis=-1, keepdims=True))
    o_ref[0] = z - lse


# ---------------------- one-time host-side param prep ----------------------
def prepare_params(params):
    """Hoisted weight re-layout, done ONCE on the host (not inside the jitted fwd)."""
    w1 = np.asarray(params['conv1_w'], np.float32)   # (10, 1, 5, 5)
    b1 = np.asarray(params['conv1_b'], np.float32)   # (10,)
    w2 = np.asarray(params['conv2_w'], np.float32)   # (20, 10, 5, 5)
    b2 = np.asarray(params['conv2_b'], np.float32)   # (20,)
    fw = np.asarray(params['fc_w'], np.float32)      # (10, 320)
    fb = np.asarray(params['fc_b'], np.float32)      # (10,)

    # conv1 banded matrices: y1 = sum_i x[i:i+24,:] @ M1[i],
    # with M1[i, ow+j, ow*10+co] = w1[co, 0, i, j].
    m1 = np.zeros((K, W0, W1 * C1), np.float32)
    for i in range(K):
        for j in range(K):
            for ow in range(W1):
                m1[i, ow + j, ow * C1:(ow + 1) * C1] = w1[:, 0, i, j]
    b1e = np.tile(b1, W1)[None, :]                    # (1, 240), lane = ow*10+co

    # conv2 banded matrices on the (12, 120)=(h, w*10+ci) activation:
    # M2[i, (ow+j)*10+ci, ow*20+co] = w2[co, ci, i, j].
    m2 = np.zeros((K, P1 * C1, W2 * C2), np.float32)
    for i in range(K):
        for j in range(K):
            for ow in range(W2):
                m2[i, (ow + j) * C1:(ow + j + 1) * C1,
                   ow * C2:(ow + 1) * C2] = w2[:, :, i, j].T
    b2e = np.tile(b2, W2)[None, :]                    # (1, 160), lane = ow*20+co

    # FC weight permuted so the kernel's (h, w, c) flatten matches PyTorch's
    # NCHW .view(N, -1) order: fc_w_perm[(p*4+q)*20 + co, k] = fc_w[k, co*16 + p*4 + q]
    fw_perm = fw.reshape(NCLASS, C2, P2, P2).transpose(0, 2, 3, 1) \
                .reshape(NCLASS, FLAT).T.copy()
    fbe = fb[None, :]                                 # (1, 10)

    return dict(m1=jnp.asarray(m1), b1=jnp.asarray(b1e),
                m2=jnp.asarray(m2), b2=jnp.asarray(b2e),
                fcw=jnp.asarray(fw_perm), fcb=jnp.asarray(fbe))


# ------------------------------ forward pass ------------------------------
def net_forward(x_nchw, prep):
    N = x_nchw.shape[0]
    x = x_nchw.reshape(N, H0, W0).astype(jnp.float32)   # Cin == 1

    # Advisory cost hint for the XLA scheduler around this custom call.
    matmul_macs = K * H1 * W0 * (W1 * C1) + K * H2 * (P1 * C1) * (W2 * C2) \
        + FLAT * NCLASS
    weight_elems = K * W0 * (W1 * C1) + (W1 * C1) \
        + K * (P1 * C1) * (W2 * C2) + (W2 * C2) + FLAT * NCLASS + NCLASS
    cost = pl.CostEstimate(
        flops=2 * N * matmul_macs,
        transcendentals=N * (NCLASS + 1),
        bytes_accessed=4 * (N * H0 * W0 + weight_elems + N * NCLASS),
    )

    out = pl.pallas_call(
        fused_net_kernel,
        out_shape=jax.ShapeDtypeStruct((N, 1, NCLASS), jnp.float32),
        grid_spec=pltpu.PrefetchScalarGridSpec(
            num_scalar_prefetch=0,
            grid=(N,),
            in_specs=[
                pl.BlockSpec((1, H0, W0), lambda n: (n, 0, 0)),           # image
                pl.BlockSpec((K, W0, W1 * C1), lambda n: (0, 0, 0)),      # M1
                pl.BlockSpec((1, W1 * C1), lambda n: (0, 0)),             # b1 tiled
                pl.BlockSpec((K, P1 * C1, W2 * C2), lambda n: (0, 0, 0)),  # M2
                pl.BlockSpec((1, W2 * C2), lambda n: (0, 0)),             # b2 tiled
                pl.BlockSpec((FLAT, NCLASS), lambda n: (0, 0)),           # fc weight
                pl.BlockSpec((1, NCLASS), lambda n: (0, 0)),              # fc bias
            ],
            out_specs=pl.BlockSpec((1, 1, NCLASS), lambda n: (n, 0, 0)),
            scratch_shapes=[
                pltpu.VMEM((H1, P1 * C1), jnp.float32),   # (24, 120) W-pooled conv1
                pltpu.VMEM((P1, P1 * C1), jnp.float32),   # (12, 120) pooled+relu act1
                pltpu.VMEM((H2, P2 * C2), jnp.float32),   # (8, 80)   W-pooled conv2
                pltpu.VMEM((1, FLAT), jnp.float32),       # (1, 320)  flattened fc in
            ],
        ),
        compiler_params=pltpu.CompilerParams(
            dimension_semantics=("parallel",)),           # megacore-split on v7x
        cost_estimate=cost,
    )(x, prep['m1'], prep['b1'], prep['m2'], prep['b2'], prep['fcw'], prep['fcb'])

    return out.reshape(N, NCLASS)


# ---------------------- pure-JAX reference (correctness) ----------------------
def net_reference(x_nchw, params):
    """Straight XLA implementation of the PyTorch forward, f32 HIGHEST precision."""
    prec = lax.Precision.HIGHEST
    dn = ('NCHW', 'OIHW', 'NCHW')
    y = lax.conv_general_dilated(x_nchw.astype(jnp.float32), params['conv1_w'],
                                 (1, 1), 'VALID', dimension_numbers=dn,
                                 precision=prec)
    y = y + params['conv1_b'][None, :, None, None]
    y = lax.reduce_window(y, -jnp.inf, lax.max, (1, 1, 2, 2), (1, 1, 2, 2), 'VALID')
    y = jnp.maximum(y, 0.0)
    y = lax.conv_general_dilated(y, params['conv2_w'], (1, 1), 'VALID',
                                 dimension_numbers=dn, precision=prec)
    y = y + params['conv2_b'][None, :, None, None]
    y = lax.reduce_window(y, -jnp.inf, lax.max, (1, 1, 2, 2), (1, 1, 2, 2), 'VALID')
    y = jnp.maximum(y, 0.0)
    y = y.reshape(y.shape[0], -1)                         # NCHW flatten, (N, 320)
    logits = jnp.dot(y, params['fc_w'].T, precision=prec) + params['fc_b']
    return jax.nn.log_softmax(logits, axis=-1)


# ------------------------------ params / main ------------------------------
def init_params(key):
    # Deterministic synthetic params, PyTorch-like uniform(-1/sqrt(fan_in), +1/sqrt(fan_in))
    ks = jax.random.split(key, 6)

    def u(k, shape, fan_in):
        bound = 1.0 / float(fan_in) ** 0.5
        return jax.random.uniform(k, shape, jnp.float32, -bound, bound)

    return {
        'conv1_w': u(ks[0], (10, 1, 5, 5), 1 * 5 * 5),
        'conv1_b': u(ks[1], (10,), 1 * 5 * 5),
        'conv2_w': u(ks[2], (20, 10, 5, 5), 10 * 5 * 5),
        'conv2_b': u(ks[3], (20,), 10 * 5 * 5),
        'fc_w':    u(ks[4], (10, 320), 320),
        'fc_b':    u(ks[5], (10,), 320),
    }


if __name__ == "__main__":
    key = jax.random.PRNGKey(0)
    pkey, xkey = jax.random.split(key)
    params = init_params(pkey)
    prep = prepare_params(params)                 # one-time weight re-layout
    # MNIST-shaped input (28x28 forced by fc's 320 = 20*4*4); small batch = 2.
    x = jax.random.normal(xkey, (2, 1, 28, 28), jnp.float32)

    fwd = jax.jit(net_forward)
    out = jax.block_until_ready(fwd(x, prep))
    assert out.shape == (2, NCLASS)
    assert bool(jnp.all(jnp.isfinite(out)))

    # Correctness against the pure-JAX / XLA reference of the PyTorch forward.
    ref = jax.block_until_ready(net_reference(x, params))
    max_err = float(jnp.max(jnp.abs(out - ref)))
    assert max_err < 1e-4, f"mismatch vs reference, max_err={max_err}"

    print("KERNEL_OK")
</pallas_src>

<mosaic_0001>
module attributes {stable_mosaic.version = 11 : i64} {
  func.func @fused_net_kernel(%arg0: i32, %arg1: memref<1x28x28xf32, #tpu.memory_space<vmem>>, %arg2: memref<5x28x240xf32, #tpu.memory_space<vmem>>, %arg3: memref<1x240xf32, #tpu.memory_space<vmem>>, %arg4: memref<5x120x160xf32, #tpu.memory_space<vmem>>, %arg5: memref<1x160xf32, #tpu.memory_space<vmem>>, %arg6: memref<320x10xf32, #tpu.memory_space<vmem>>, %arg7: memref<1x10xf32, #tpu.memory_space<vmem>>, %arg8: memref<1x1x10xf32, #tpu.memory_space<vmem>>, %arg9: memref<24x120xf32, #tpu.memory_space<vmem>>, %arg10: memref<12x120xf32, #tpu.memory_space<vmem>>, %arg11: memref<8x80xf32, #tpu.memory_space<vmem>>, %arg12: memref<1x320xf32, #tpu.memory_space<vmem>>) attributes {dimension_semantics = [#tpu.dimension_semantics<parallel>], iteration_bounds = array<i64: 2>, scalar_prefetch = 0 : i64, scratch_operands = 4 : i64, tpu.core_type = #tpu.core_type<tc>, window_params = [{transform_indices = @transform_0, window_bounds = array<i64: 1, 28, 28>}, {pipeline_mode = #tpu.pipeline_mode<synchronous>, transform_indices = @transform_1, window_bounds = array<i64: 5, 28, 240>}, {pipeline_mode = #tpu.pipeline_mode<synchronous>, transform_indices = @transform_2, window_bounds = array<i64: 1, 240>}, {pipeline_mode = #tpu.pipeline_mode<synchronous>, transform_indices = @transform_3, window_bounds = array<i64: 5, 120, 160>}, {pipeline_mode = #tpu.pipeline_mode<synchronous>, transform_indices = @transform_4, window_bounds = array<i64: 1, 160>}, {pipeline_mode = #tpu.pipeline_mode<synchronous>, transform_indices = @transform_5, window_bounds = array<i64: 320, 10>}, {pipeline_mode = #tpu.pipeline_mode<synchronous>, transform_indices = @transform_6, window_bounds = array<i64: 1, 10>}, {transform_indices = @transform_7, window_bounds = array<i64: 1, 1, 10>}]} {
    %c0 = arith.constant 0 : index
    %c0_0 = arith.constant 0 : index
    %c0_1 = arith.constant 0 : index
    %0 = vector.load %arg1[%c0, %c0_0, %c0_1] : memref<1x28x28xf32, #tpu.memory_space<vmem>>, vector<1x28x28xf32>
    %1 = vector.shape_cast %0 : vector<1x28x28xf32> to vector<28x28xf32>
    %2 = vector.extract_strided_slice %1 {offsets = [0, 0], sizes = [24, 28], strides = [1, 1]} : vector<28x28xf32> to vector<24x28xf32>
    %c0_2 = arith.constant 0 : index
    %c0_3 = arith.constant 0 : index
    %c0_4 = arith.constant 0 : index
    %3 = vector.load %arg2[%c0_2, %c0_3, %c0_4] : memref<5x28x240xf32, #tpu.memory_space<vmem>>, vector<1x28x240xf32>
    %4 = vector.shape_cast %3 : vector<1x28x240xf32> to vector<28x240xf32>
    %cst = arith.constant dense<0.000000e+00> : vector<24x240xf32>
    %5 = tpu.matmul %2, %4, %cst {dimension_numbers = #tpu.dot_dimension_numbers<[1], [0], [0], [1], [0, 0, 1, 1], [], []>} : vector<24x28xf32>, vector<28x240xf32>, vector<24x240xf32> -> vector<24x240xf32>
    %6 = vector.extract_strided_slice %1 {offsets = [1, 0], sizes = [24, 28], strides = [1, 1]} : vector<28x28xf32> to vector<24x28xf32>
    %c1 = arith.constant 1 : index
    %c0_5 = arith.constant 0 : index
    %c0_6 = arith.constant 0 : index
    %7 = vector.load %arg2[%c1, %c0_5, %c0_6] : memref<5x28x240xf32, #tpu.memory_space<vmem>>, vector<1x28x240xf32>
    %8 = vector.shape_cast %7 : vector<1x28x240xf32> to vector<28x240xf32>
    %cst_7 = arith.constant dense<0.000000e+00> : vector<24x240xf32>
    %9 = tpu.matmul %6, %8, %cst_7 {dimension_numbers = #tpu.dot_dimension_numbers<[1], [0], [0], [1], [0, 0, 1, 1], [], []>} : vector<24x28xf32>, vector<28x240xf32>, vector<24x240xf32> -> vector<24x240xf32>
    %10 = arith.addf %5, %9 : vector<24x240xf32>
    %11 = vector.extract_strided_slice %1 {offsets = [2, 0], sizes = [24, 28], strides = [1, 1]} : vector<28x28xf32> to vector<24x28xf32>
    %c2 = arith.constant 2 : index
    %c0_8 = arith.constant 0 : index
    %c0_9 = arith.constant 0 : index
    %12 = vector.load %arg2[%c2, %c0_8, %c0_9] : memref<5x28x240xf32, #tpu.memory_space<vmem>>, vector<1x28x240xf32>
    %13 = vector.shape_cast %12 : vector<1x28x240xf32> to vector<28x240xf32>
    %cst_10 = arith.constant dense<0.000000e+00> : vector<24x240xf32>
    %14 = tpu.matmul %11, %13, %cst_10 {dimension_numbers = #tpu.dot_dimension_numbers<[1], [0], [0], [1], [0, 0, 1, 1], [], []>} : vector<24x28xf32>, vector<28x240xf32>, vector<24x240xf32> -> vector<24x240xf32>
    %15 = arith.addf %10, %14 : vector<24x240xf32>
    %16 = vector.extract_strided_slice %1 {offsets = [3, 0], sizes = [24, 28], strides = [1, 1]} : vector<28x28xf32> to vector<24x28xf32>
    %c3 = arith.constant 3 : index
    %c0_11 = arith.constant 0 : index
    %c0_12 = arith.constant 0 : index
    %17 = vector.load %arg2[%c3, %c0_11, %c0_12] : memref<5x28x240xf32, #tpu.memory_space<vmem>>, vector<1x28x240xf32>
    %18 = vector.shape_cast %17 : vector<1x28x240xf32> to vector<28x240xf32>
    %cst_13 = arith.constant dense<0.000000e+00> : vector<24x240xf32>
    %19 = tpu.matmul %16, %18, %cst_13 {dimension_numbers = #tpu.dot_dimension_numbers<[1], [0], [0], [1], [0, 0, 1, 1], [], []>} : vector<24x28xf32>, vector<28x240xf32>, vector<24x240xf32> -> vector<24x240xf32>
    %20 = arith.addf %15, %19 : vector<24x240xf32>
    %21 = vector.extract_strided_slice %1 {offsets = [4, 0], sizes = [24, 28], strides = [1, 1]} : vector<28x28xf32> to vector<24x28xf32>
    %c4 = arith.constant 4 : index
    %c0_14 = arith.constant 0 : index
    %c0_15 = arith.constant 0 : index
    %22 = vector.load %arg2[%c4, %c0_14, %c0_15] : memref<5x28x240xf32, #tpu.memory_space<vmem>>, vector<1x28x240xf32>
    %23 = vector.shape_cast %22 : vector<1x28x240xf32> to vector<28x240xf32>
    %cst_16 = arith.constant dense<0.000000e+00> : vector<24x240xf32>
    %24 = tpu.matmul %21, %23, %cst_16 {dimension_numbers = #tpu.dot_dimension_numbers<[1], [0], [0], [1], [0, 0, 1, 1], [], []>} : vector<24x28xf32>, vector<28x240xf32>, vector<24x240xf32> -> vector<24x240xf32>
    %25 = arith.addf %20, %24 : vector<24x240xf32>
    %c0_17 = arith.constant 0 : index
    %c0_18 = arith.constant 0 : index
    %26 = vector.load %arg3[%c0_17, %c0_18] : memref<1x240xf32, #tpu.memory_space<vmem>>, vector<1x240xf32>
    %27 = vector.broadcast %26 : vector<1x240xf32> to vector<24x240xf32>
    %28 = arith.addf %25, %27 : vector<24x240xf32>
    %29 = vector.extract_strided_slice %28 {offsets = [0, 0], sizes = [24, 10], strides = [1, 1]} : vector<24x240xf32> to vector<24x10xf32>
    %30 = vector.extract_strided_slice %28 {offsets = [0, 10], sizes = [24, 10], strides = [1, 1]} : vector<24x240xf32> to vector<24x10xf32>
    %31 = arith.maximumf %29, %30 : vector<24x10xf32>
    %c0_19 = arith.constant 0 : index
    %c0_20 = arith.constant 0 : index
    %32 = vector.load %arg9[%c0_19, %c0_20] : memref<24x120xf32, #tpu.memory_space<vmem>>, vector<24x10xf32>
    tpu.vector_store %arg9[%c0_19, %c0_20], %31 {strides = array<i32>} : memref<24x120xf32, #tpu.memory_space<vmem>>, vector<24x10xf32>,
    %33 = vector.extract_strided_slice %28 {offsets = [0, 20], sizes = [24, 10], strides = [1, 1]} : vector<24x240xf32> to vector<24x10xf32>
    %34 = vector.extract_strided_slice %28 {offsets = [0, 30], sizes = [24, 10], strides = [1, 1]} : vector<24x240xf32> to vector<24x10xf32>
    %35 = arith.maximumf %33, %34 : vector<24x10xf32>
    %c0_21 = arith.constant 0 : index
    %c10 = arith.constant 10 : index
    %36 = vector.load %arg9[%c0_21, %c10] : memref<24x120xf32, #tpu.memory_space<vmem>>, vector<24x10xf32>
    tpu.vector_store %arg9[%c0_21, %c10], %35 {strides = array<i32>} : memref<24x120xf32, #tpu.memory_space<vmem>>, vector<24x10xf32>,
    %37 = vector.extract_strided_slice %28 {offsets = [0, 40], sizes = [24, 10], strides = [1, 1]} : vector<24x240xf32> to vector<24x10xf32>
    %38 = vector.extract_strided_slice %28 {offsets = [0, 50], sizes = [24, 10], strides = [1, 1]} : vector<24x240xf32> to vector<24x10xf32>
    %39 = arith.maximumf %37, %38 : vector<24x10xf32>
    %c0_22 = arith.constant 0 : index
    %c20 = arith.constant 20 : index
    %40 = vector.load %arg9[%c0_22, %c20] : memref<24x120xf32, #tpu.memory_space<vmem>>, vector<24x10xf32>
    tpu.vector_store %arg9[%c0_22, %c20], %39 {strides = array<i32>} : memref<24x120xf32, #tpu.memory_space<vmem>>, vector<24x10xf32>,
    %41 = vector.extract_strided_slice %28 {offsets = [0, 60], sizes = [24, 10], strides = [1, 1]} : vector<24x240xf32> to vector<24x10xf32>
    %42 = vector.extract_strided_slice %28 {offsets = [0, 70], sizes = [24, 10], strides = [1, 1]} : vector<24x240xf32> to vector<24x10xf32>
    %43 = arith.maximumf %41, %42 : vector<24x10xf32>
    %c0_23 = arith.constant 0 : index
    %c30 = arith.constant 30 : index
    %44 = vector.load %arg9[%c0_23, %c30] : memref<24x120xf32, #tpu.memory_space<vmem>>, vector<24x10xf32>
    tpu.vector_store %arg9[%c0_23, %c30], %43 {strides = array<i32>} : memref<24x120xf32, #tpu.memory_space<vmem>>, vector<24x10xf32>,
    %45 = vector.extract_strided_slice %28 {offsets = [0, 80], sizes = [24, 10], strides = [1, 1]} : vector<24x240xf32> to vector<24x10xf32>
    %46 = vector.extract_strided_slice %28 {offsets = [0, 90], sizes = [24, 10], strides = [1, 1]} : vector<24x240xf32> to vector<24x10xf32>
    %47 = arith.maximumf %45, %46 : vector<24x10xf32>
    %c0_24 = arith.constant 0 : index
    %c40 = arith.constant 40 : index
    %48 = vector.load %arg9[%c0_24, %c40] : memref<24x120xf32, #tpu.memory_space<vmem>>, vector<24x10xf32>
    tpu.vector_store %arg9[%c0_24, %c40], %47 {strides = array<i32>} : memref<24x120xf32, #tpu.memory_space<vmem>>, vector<24x10xf32>,
    %49 = vector.extract_strided_slice %28 {offsets = [0, 100], sizes = [24, 10], strides = [1, 1]} : vector<24x240xf32> to vector<24x10xf32>
    %50 = vector.extract_strided_slice %28 {offsets = [0, 110], sizes = [24, 10], strides = [1, 1]} : vector<24x240xf32> to vector<24x10xf32>
    %51 = arith.maximumf %49, %50 : vector<24x10xf32>
    %c0_25 = arith.constant 0 : index
    %c50 = arith.constant 50 : index
    %52 = vector.load %arg9[%c0_25, %c50] : memref<24x120xf32, #tpu.memory_space<vmem>>, vector<24x10xf32>
    tpu.vector_store %arg9[%c0_25, %c50], %51 {strides = array<i32>} : memref<24x120xf32, #tpu.memory_space<vmem>>, vector<24x10xf32>,
    %53 = vector.extract_strided_slice %28 {offsets = [0, 120], sizes = [24, 10], strides = [1, 1]} : vector<24x240xf32> to vector<24x10xf32>
    %54 = vector.extract_strided_slice %28 {offsets = [0, 130], sizes = [24, 10], strides = [1, 1]} : vector<24x240xf32> to vector<24x10xf32>
    %55 = arith.maximumf %53, %54 : vector<24x10xf32>
    %c0_26 = arith.constant 0 : index
    %c60 = arith.constant 60 : index
    %56 = vector.load %arg9[%c0_26, %c60] : memref<24x120xf32, #tpu.memory_space<vmem>>, vector<24x10xf32>
    tpu.vector_store %arg9[%c0_26, %c60], %55 {strides = array<i32>} : memref<24x120xf32, #tpu.memory_space<vmem>>, vector<24x10xf32>,
    %57 = vector.extract_strided_slice %28 {offsets = [0, 140], sizes = [24, 10], strides = [1, 1]} : vector<24x240xf32> to vector<24x10xf32>
    %58 = vector.extract_strided_slice %28 {offsets = [0, 150], sizes = [24, 10], strides = [1, 1]} : vector<24x240xf32> to vector<24x10xf32>
    %59 = arith.maximumf %57, %58 : vector<24x10xf32>
    %c0_27 = arith.constant 0 : index
    %c70 = arith.constant 70 : index
    %60 = vector.load %arg9[%c0_27, %c70] : memref<24x120xf32, #tpu.memory_space<vmem>>, vector<24x10xf32>
    tpu.vector_store %arg9[%c0_27, %c70], %59 {strides = array<i32>} : memref<24x120xf32, #tpu.memory_space<vmem>>, vector<24x10xf32>,
    %61 = vector.extract_strided_slice %28 {offsets = [0, 160], sizes = [24, 10], strides = [1, 1]} : vector<24x240xf32> to vector<24x10xf32>
    %62 = vector.extract_strided_slice %28 {offsets = [0, 170], sizes = [24, 10], strides = [1, 1]} : vector<24x240xf32> to vector<24x10xf32>
    %63 = arith.maximumf %61, %62 : vector<24x10xf32>
    %c0_28 = arith.constant 0 : index
    %c80 = arith.constant 80 : index
    %64 = vector.load %arg9[%c0_28, %c80] : memref<24x120xf32, #tpu.memory_space<vmem>>, vector<24x10xf32>
    tpu.vector_store %arg9[%c0_28, %c80], %63 {strides = array<i32>} : memref<24x120xf32, #tpu.memory_space<vmem>>, vector<24x10xf32>,
    %65 = vector.extract_strided_slice %28 {offsets = [0, 180], sizes = [24, 10], strides = [1, 1]} : vector<24x240xf32> to vector<24x10xf32>
    %66 = vector.extract_strided_slice %28 {offsets = [0, 190], sizes = [24, 10], strides = [1, 1]} : vector<24x240xf32> to vector<24x10xf32>
    %67 = arith.maximumf %65, %66 : vector<24x10xf32>
    %c0_29 = arith.constant 0 : index
    %c90 = arith.constant 90 : index
    %68 = vector.load %arg9[%c0_29, %c90] : memref<24x120xf32, #tpu.memory_space<vmem>>, vector<24x10xf32>
    tpu.vector_store %arg9[%c0_29, %c90], %67 {strides = array<i32>} : memref<24x120xf32, #tpu.memory_space<vmem>>, vector<24x10xf32>,
    %69 = vector.extract_strided_slice %28 {offsets = [0, 200], sizes = [24, 10], strides = [1, 1]} : vector<24x240xf32> to vector<24x10xf32>
    %70 = vector.extract_strided_slice %28 {offsets = [0, 210], sizes = [24, 10], strides = [1, 1]} : vector<24x240xf32> to vector<24x10xf32>
    %71 = arith.maximumf %69, %70 : vector<24x10xf32>
    %c0_30 = arith.constant 0 : index
    %c100 = arith.constant 100 : index
    %72 = vector.load %arg9[%c0_30, %c100] : memref<24x120xf32, #tpu.memory_space<vmem>>, vector<24x10xf32>
    tpu.vector_store %arg9[%c0_30, %c100], %71 {strides = array<i32>} : memref<24x120xf32, #tpu.memory_space<vmem>>, vector<24x10xf32>,
    %73 = vector.extract_strided_slice %28 {offsets = [0, 220], sizes = [24, 10], strides = [1, 1]} : vector<24x240xf32> to vector<24x10xf32>
    %74 = vector.extract_strided_slice %28 {offsets = [0, 230], sizes = [24, 10], strides = [1, 1]} : vector<24x240xf32> to vector<24x10xf32>
    %75 = arith.maximumf %73, %74 : vector<24x10xf32>
    %c0_31 = arith.constant 0 : index
    %c110 = arith.constant 110 : index
    %76 = vector.load %arg9[%c0_31, %c110] : memref<24x120xf32, #tpu.memory_space<vmem>>, vector<24x10xf32>
    tpu.vector_store %arg9[%c0_31, %c110], %75 {strides = array<i32>} : memref<24x120xf32, #tpu.memory_space<vmem>>, vector<24x10xf32>,
    %c0_32 = arith.constant 0 : index
    %c0_33 = arith.constant 0 : index
    %77 = vector.load %arg9[%c0_32, %c0_33] : memref<24x120xf32, #tpu.memory_space<vmem>>, vector<1x120xf32>
    %c1_34 = arith.constant 1 : index
    %c0_35 = arith.constant 0 : index
    %78 = vector.load %arg9[%c1_34, %c0_35] : memref<24x120xf32, #tpu.memory_space<vmem>>, vector<1x120xf32>
    %79 = arith.maximumf %77, %78 : vector<1x120xf32>
    %cst_36 = arith.constant 0.000000e+00 : f32
    %80 = vector.broadcast %cst_36 : f32 to vector<1x120xf32>
    %81 = arith.maximumf %79, %80 : vector<1x120xf32>
    %c0_37 = arith.constant 0 : index
    %c0_38 = arith.constant 0 : index
    %82 = vector.load %arg10[%c0_37, %c0_38] : memref<12x120xf32, #tpu.memory_space<vmem>>, vector<1x120xf32>
    tpu.vector_store %arg10[%c0_37, %c0_38], %81 {strides = array<i32>} : memref<12x120xf32, #tpu.memory_space<vmem>>, vector<1x120xf32>,
    %c2_39 = arith.constant 2 : index
    %c0_40 = arith.constant 0 : index
    %83 = vector.load %arg9[%c2_39, %c0_40] : memref<24x120xf32, #tpu.memory_space<vmem>>, vector<1x120xf32>
    %c3_41 = arith.constant 3 : index
    %c0_42 = arith.constant 0 : index
    %84 = vector.load %arg9[%c3_41, %c0_42] : memref<24x120xf32, #tpu.memory_space<vmem>>, vector<1x120xf32>
    %85 = arith.maximumf %83, %84 : vector<1x120xf32>
    %cst_43 = arith.constant 0.000000e+00 : f32
    %86 = vector.broadcast %cst_43 : f32 to vector<1x120xf32>
    %87 = arith.maximumf %85, %86 : vector<1x120xf32>
    %c1_44 = arith.constant 1 : index
    %c0_45 = arith.constant 0 : index
    %88 = vector.load %arg10[%c1_44, %c0_45] : memref<12x120xf32, #tpu.memory_space<vmem>>, vector<1x120xf32>
    tpu.vector_store %arg10[%c1_44, %c0_45], %87 {strides = array<i32>} : memref<12x120xf32, #tpu.memory_space<vmem>>, vector<1x120xf32>,
    %c4_46 = arith.constant 4 : index
    %c0_47 = arith.constant 0 : index
    %89 = vector.load %arg9[%c4_46, %c0_47] : memref<24x120xf32, #tpu.memory_space<vmem>>, vector<1x120xf32>
    %c5 = arith.constant 5 : index
    %c0_48 = arith.constant 0 : index
    %90 = vector.load %arg9[%c5, %c0_48] : memref<24x120xf32, #tpu.memory_space<vmem>>, vector<1x120xf32>
    %91 = arith.maximumf %89, %90 : vector<1x120xf32>
    %cst_49 = arith.constant 0.000000e+00 : f32
    %92 = vector.broadcast %cst_49 : f32 to vector<1x120xf32>
    %93 = arith.maximumf %91, %92 : vector<1x120xf32>
    %c2_50 = arith.constant 2 : index
    %c0_51 = arith.constant 0 : index
    %94 = vector.load %arg10[%c2_50, %c0_51] : memref<12x120xf32, #tpu.memory_space<vmem>>, vector<1x120xf32>
    tpu.vector_store %arg10[%c2_50, %c0_51], %93 {strides = array<i32>} : memref<12x120xf32, #tpu.memory_space<vmem>>, vector<1x120xf32>,
    %c6 = arith.constant 6 : index
    %c0_52 = arith.constant 0 : index
    %95 = vector.load %arg9[%c6, %c0_52] : memref<24x120xf32, #tpu.memory_space<vmem>>, vector<1x120xf32>
    %c7 = arith.constant 7 : index
    %c0_53 = arith.constant 0 : index
    %96 = vector.load %arg9[%c7, %c0_53] : memref<24x120xf32, #tpu.memory_space<vmem>>, vector<1x120xf32>
    %97 = arith.maximumf %95, %96 : vector<1x120xf32>
    %cst_54 = arith.constant 0.000000e+00 : f32
    %98 = vector.broadcast %cst_54 : f32 to vector<1x120xf32>
    %99 = arith.maximumf %97, %98 : vector<1x120xf32>
    %c3_55 = arith.constant 3 : index
    %c0_56 = arith.constant 0 : index
    %100 = vector.load %arg10[%c3_55, %c0_56] : memref<12x120xf32, #tpu.memory_space<vmem>>, vector<1x120xf32>
    tpu.vector_store %arg10[%c3_55, %c0_56], %99 {strides = array<i32>} : memref<12x120xf32, #tpu.memory_space<vmem>>, vector<1x120xf32>,
    %c8 = arith.constant 8 : index
    %c0_57 = arith.constant 0 : index
    %101 = vector.load %arg9[%c8, %c0_57] : memref<24x120xf32, #tpu.memory_space<vmem>>, vector<1x120xf32>
    %c9 = arith.constant 9 : index
    %c0_58 = arith.constant 0 : index
    %102 = vector.load %arg9[%c9, %c0_58] : memref<24x120xf32, #tpu.memory_space<vmem>>, vector<1x120xf32>
    %103 = arith.maximumf %101, %102 : vector<1x120xf32>
    %cst_59 = arith.constant 0.000000e+00 : f32
    %104 = vector.broadcast %cst_59 : f32 to vector<1x120xf32>
    %105 = arith.maximumf %103, %104 : vector<1x120xf32>
    %c4_60 = arith.constant 4 : index
    %c0_61 = arith.constant 0 : index
    %106 = vector.load %arg10[%c4_60, %c0_61] : memref<12x120xf32, #tpu.memory_space<vmem>>, vector<1x120xf32>
    tpu.vector_store %arg10[%c4_60, %c0_61], %105 {strides = array<i32>} : memref<12x120xf32, #tpu.memory_space<vmem>>, vector<1x120xf32>,
    %c10_62 = arith.constant 10 : index
    %c0_63 = arith.constant 0 : index
    %107 = vector.load %arg9[%c10_62, %c0_63] : memref<24x120xf32, #tpu.memory_space<vmem>>, vector<1x120xf32>
    %c11 = arith.constant 11 : index
    %c0_64 = arith.constant 0 : index
    %108 = vector.load %arg9[%c11, %c0_64] : memref<24x120xf32, #tpu.memory_space<vmem>>, vector<1x120xf32>
    %109 = arith.maximumf %107, %108 : vector<1x120xf32>
    %cst_65 = arith.constant 0.000000e+00 : f32
    %110 = vector.broadcast %cst_65 : f32 to vector<1x120xf32>
    %111 = arith.maximumf %109, %110 : vector<1x120xf32>
    %c5_66 = arith.constant 5 : index
    %c0_67 = arith.constant 0 : index
    %112 = vector.load %arg10[%c5_66, %c0_67] : memref<12x120xf32, #tpu.memory_space<vmem>>, vector<1x120xf32>
    tpu.vector_store %arg10[%c5_66, %c0_67], %111 {strides = array<i32>} : memref<12x120xf32, #tpu.memory_space<vmem>>, vector<1x120xf32>,
    %c12 = arith.constant 12 : index
    %c0_68 = arith.constant 0 : index
    %113 = vector.load %arg9[%c12, %c0_68] : memref<24x120xf32, #tpu.memory_space<vmem>>, vector<1x120xf32>
    %c13 = arith.constant 13 : index
    %c0_69 = arith.constant 0 : index
    %114 = vector.load %arg9[%c13, %c0_69] : memref<24x120xf32, #tpu.memory_space<vmem>>, vector<1x120xf32>
    %115 = arith.maximumf %113, %114 : vector<1x120xf32>
    %cst_70 = arith.constant 0.000000e+00 : f32
    %116 = vector.broadcast %cst_70 : f32 to vector<1x120xf32>
    %117 = arith.maximumf %115, %116 : vector<1x120xf32>
    %c6_71 = arith.constant 6 : index
    %c0_72 = arith.constant 0 : index
    %118 = vector.load %arg10[%c6_71, %c0_72] : memref<12x120xf32, #tpu.memory_space<vmem>>, vector<1x120xf32>
    tpu.vector_store %arg10[%c6_71, %c0_72], %117 {strides = array<i32>} : memref<12x120xf32, #tpu.memory_space<vmem>>, vector<1x120xf32>,
    %c14 = arith.constant 14 : index
    %c0_73 = arith.constant 0 : index
    %119 = vector.load %arg9[%c14, %c0_73] : memref<24x120xf32, #tpu.memory_space<vmem>>, vector<1x120xf32>
    %c15 = arith.constant 15 : index
    %c0_74 = arith.constant 0 : index
    %120 = vector.load %arg9[%c15, %c0_74] : memref<24x120xf32, #tpu.memory_space<vmem>>, vector<1x120xf32>
    %121 = arith.maximumf %119, %120 : vector<1x120xf32>
    %cst_75 = arith.constant 0.000000e+00 : f32
    %122 = vector.broadcast %cst_75 : f32 to vector<1x120xf32>
    %123 = arith.maximumf %121, %122 : vector<1x120xf32>
    %c7_76 = arith.constant 7 : index
    %c0_77 = arith.constant 0 : index
    %124 = vector.load %arg10[%c7_76, %c0_77] : memref<12x120xf32, #tpu.memory_space<vmem>>, vector<1x120xf32>
    tpu.vector_store %arg10[%c7_76, %c0_77], %123 {strides = array<i32>} : memref<12x120xf32, #tpu.memory_space<vmem>>, vector<1x120xf32>,
    %c16 = arith.constant 16 : index
    %c0_78 = arith.constant 0 : index
    %125 = vector.load %arg9[%c16, %c0_78] : memref<24x120xf32, #tpu.memory_space<vmem>>, vector<1x120xf32>
    %c17 = arith.constant 17 : index
    %c0_79 = arith.constant 0 : index
    %126 = vector.load %arg9[%c17, %c0_79] : memref<24x120xf32, #tpu.memory_space<vmem>>, vector<1x120xf32>
    %127 = arith.maximumf %125, %126 : vector<1x120xf32>
    %cst_80 = arith.constant 0.000000e+00 : f32
    %128 = vector.broadcast %cst_80 : f32 to vector<1x120xf32>
    %129 = arith.maximumf %127, %128 : vector<1x120xf32>
    %c8_81 = arith.constant 8 : index
    %c0_82 = arith.constant 0 : index
    %130 = vector.load %arg10[%c8_81, %c0_82] : memref<12x120xf32, #tpu.memory_space<vmem>>, vector<1x120xf32>
    tpu.vector_store %arg10[%c8_81, %c0_82], %129 {strides = array<i32>} : memref<12x120xf32, #tpu.memory_space<vmem>>, vector<1x120xf32>,
    %c18 = arith.constant 18 : index
    %c0_83 = arith.constant 0 : index
    %131 = vector.load %arg9[%c18, %c0_83] : memref<24x120xf32, #tpu.memory_space<vmem>>, vector<1x120xf32>
    %c19 = arith.constant 19 : index
    %c0_84 = arith.constant 0 : index
    %132 = vector.load %arg9[%c19, %c0_84] : memref<24x120xf32, #tpu.memory_space<vmem>>, vector<1x120xf32>
    %133 = arith.maximumf %131, %132 : vector<1x120xf32>
    %cst_85 = arith.constant 0.000000e+00 : f32
    %134 = vector.broadcast %cst_85 : f32 to vector<1x120xf32>
    %135 = arith.maximumf %133, %134 : vector<1x120xf32>
    %c9_86 = arith.constant 9 : index
    %c0_87 = arith.constant 0 : index
    %136 = vector.load %arg10[%c9_86, %c0_87] : memref<12x120xf32, #tpu.memory_space<vmem>>, vector<1x120xf32>
    tpu.vector_store %arg10[%c9_86, %c0_87], %135 {strides = array<i32>} : memref<12x120xf32, #tpu.memory_space<vmem>>, vector<1x120xf32>,
    %c20_88 = arith.constant 20 : index
    %c0_89 = arith.constant 0 : index
    %137 = vector.load %arg9[%c20_88, %c0_89] : memref<24x120xf32, #tpu.memory_space<vmem>>, vector<1x120xf32>
    %c21 = arith.constant 21 : index
    %c0_90 = arith.constant 0 : index
    %138 = vector.load %arg9[%c21, %c0_90] : memref<24x120xf32, #tpu.memory_space<vmem>>, vector<1x120xf32>
    %139 = arith.maximumf %137, %138 : vector<1x120xf32>
    %cst_91 = arith.constant 0.000000e+00 : f32
    %140 = vector.broadcast %cst_91 : f32 to vector<1x120xf32>
    %141 = arith.maximumf %139, %140 : vector<1x120xf32>
    %c10_92 = arith.constant 10 : index
    %c0_93 = arith.constant 0 : index
    %142 = vector.load %arg10[%c10_92, %c0_93] : memref<12x120xf32, #tpu.memory_space<vmem>>, vector<1x120xf32>
    tpu.vector_store %arg10[%c10_92, %c0_93], %141 {strides = array<i32>} : memref<12x120xf32, #tpu.memory_space<vmem>>, vector<1x120xf32>,
    %c22 = arith.constant 22 : index
    %c0_94 = arith.constant 0 : index
    %143 = vector.load %arg9[%c22, %c0_94] : memref<24x120xf32, #tpu.memory_space<vmem>>, vector<1x120xf32>
    %c23 = arith.constant 23 : index
    %c0_95 = arith.constant 0 : index
    %144 = vector.load %arg9[%c23, %c0_95] : memref<24x120xf32, #tpu.memory_space<vmem>>, vector<1x120xf32>
    %145 = arith.maximumf %143, %144 : vector<1x120xf32>
    %cst_96 = arith.constant 0.000000e+00 : f32
    %146 = vector.broadcast %cst_96 : f32 to vector<1x120xf32>
    %147 = arith.maximumf %145, %146 : vector<1x120xf32>
    %c11_97 = arith.constant 11 : index
    %c0_98 = arith.constant 0 : index
    %148 = vector.load %arg10[%c11_97, %c0_98] : memref<12x120xf32, #tpu.memory_space<vmem>>, vector<1x120xf32>
    tpu.vector_store %arg10[%c11_97, %c0_98], %147 {strides = array<i32>} : memref<12x120xf32, #tpu.memory_space<vmem>>, vector<1x120xf32>,
    %c0_99 = arith.constant 0 : index
    %c0_100 = arith.constant 0 : index
    %149 = vector.load %arg10[%c0_99, %c0_100] : memref<12x120xf32, #tpu.memory_space<vmem>>, vector<8x120xf32>
    %c0_101 = arith.constant 0 : index
    %c0_102 = arith.constant 0 : index
    %c0_103 = arith.constant 0 : index
    %150 = vector.load %arg4[%c0_101, %c0_102, %c0_103] : memref<5x120x160xf32, #tpu.memory_space<vmem>>, vector<1x120x160xf32>
    %151 = vector.shape_cast %150 : vector<1x120x160xf32> to vector<120x160xf32>
    %cst_104 = arith.constant dense<0.000000e+00> : vector<8x160xf32>
    %152 = tpu.matmul %149, %151, %cst_104 {dimension_numbers = #tpu.dot_dimension_numbers<[1], [0], [0], [1], [0, 0, 1, 1], [], []>} : vector<8x120xf32>, vector<120x160xf32>, vector<8x160xf32> -> vector<8x160xf32>
    %c1_105 = arith.constant 1 : index
    %c0_106 = arith.constant 0 : index
    %153 = vector.load %arg10[%c1_105, %c0_106] : memref<12x120xf32, #tpu.memory_space<vmem>>, vector<8x120xf32>
    %c1_107 = arith.constant 1 : index
    %c0_108 = arith.constant 0 : index
    %c0_109 = arith.constant 0 : index
    %154 = vector.load %arg4[%c1_107, %c0_108, %c0_109] : memref<5x120x160xf32, #tpu.memory_space<vmem>>, vector<1x120x160xf32>
    %155 = vector.shape_cast %154 : vector<1x120x160xf32> to vector<120x160xf32>
    %cst_110 = arith.constant dense<0.000000e+00> : vector<8x160xf32>
    %156 = tpu.matmul %153, %155, %cst_110 {dimension_numbers = #tpu.dot_dimension_numbers<[1], [0], [0], [1], [0, 0, 1, 1], [], []>} : vector<8x120xf32>, vector<120x160xf32>, vector<8x160xf32> -> vector<8x160xf32>
    %157 = arith.addf %152, %156 : vector<8x160xf32>
    %c2_111 = arith.constant 2 : index
    %c0_112 = arith.constant 0 : index
    %158 = vector.load %arg10[%c2_111, %c0_112] : memref<12x120xf32, #tpu.memory_space<vmem>>, vector<8x120xf32>
    %c2_113 = arith.constant 2 : index
    %c0_114 = arith.constant 0 : index
    %c0_115 = arith.constant 0 : index
    %159 = vector.load %arg4[%c2_113, %c0_114, %c0_115] : memref<5x120x160xf32, #tpu.memory_space<vmem>>, vector<1x120x160xf32>
    %160 = vector.shape_cast %159 : vector<1x120x160xf32> to vector<120x160xf32>
    %cst_116 = arith.constant dense<0.000000e+00> : vector<8x160xf32>
    %161 = tpu.matmul %158, %160, %cst_116 {dimension_numbers = #tpu.dot_dimension_numbers<[1], [0], [0], [1], [0, 0, 1, 1], [], []>} : vector<8x120xf32>, vector<120x160xf32>, vector<8x160xf32> -> vector<8x160xf32>
    %162 = arith.addf %157, %161 : vector<8x160xf32>
    %c3_117 = arith.constant 3 : index
    %c0_118 = arith.constant 0 : index
    %163 = vector.load %arg10[%c3_117, %c0_118] : memref<12x120xf32, #tpu.memory_space<vmem>>, vector<8x120xf32>
    %c3_119 = arith.constant 3 : index
    %c0_120 = arith.constant 0 : index
    %c0_121 = arith.constant 0 : index
    %164 = vector.load %arg4[%c3_119, %c0_120, %c0_121] : memref<5x120x160xf32, #tpu.memory_space<vmem>>, vector<1x120x160xf32>
    %165 = vector.shape_cast %164 : vector<1x120x160xf32> to vector<120x160xf32>
    %cst_122 = arith.constant dense<0.000000e+00> : vector<8x160xf32>
    %166 = tpu.matmul %163, %165, %cst_122 {dimension_numbers = #tpu.dot_dimension_numbers<[1], [0], [0], [1], [0, 0, 1, 1], [], []>} : vector<8x120xf32>, vector<120x160xf32>, vector<8x160xf32> -> vector<8x160xf32>
    %167 = arith.addf %162, %166 : vector<8x160xf32>
    %c4_123 = arith.constant 4 : index
    %c0_124 = arith.constant 0 : index
    %168 = vector.load %arg10[%c4_123, %c0_124] : memref<12x120xf32, #tpu.memory_space<vmem>>, vector<8x120xf32>
    %c4_125 = arith.constant 4 : index
    %c0_126 = arith.constant 0 : index
    %c0_127 = arith.constant 0 : index
    %169 = vector.load %arg4[%c4_125, %c0_126, %c0_127] : memref<5x120x160xf32, #tpu.memory_space<vmem>>, vector<1x120x160xf32>
    %170 = vector.shape_cast %169 : vector<1x120x160xf32> to vector<120x160xf32>
    %cst_128 = arith.constant dense<0.000000e+00> : vector<8x160xf32>
    %171 = tpu.matmul %168, %170, %cst_128 {dimension_numbers = #tpu.dot_dimension_numbers<[1], [0], [0], [1], [0, 0, 1, 1], [], []>} : vector<8x120xf32>, vector<120x160xf32>, vector<8x160xf32> -> vector<8x160xf32>
    %172 = arith.addf %167, %171 : vector<8x160xf32>
    %c0_129 = arith.constant 0 : index
    %c0_130 = arith.constant 0 : index
    %173 = vector.load %arg5[%c0_129, %c0_130] : memref<1x160xf32, #tpu.memory_space<vmem>>, vector<1x160xf32>
    %174 = vector.broadcast %173 : vector<1x160xf32> to vector<8x160xf32>
    %175 = arith.addf %172, %174 : vector<8x160xf32>
    %176 = vector.extract_strided_slice %175 {offsets = [0, 0], sizes = [8, 20], strides = [1, 1]} : vector<8x160xf32> to vector<8x20xf32>
    %177 = vector.extract_strided_slice %175 {offsets = [0, 20], sizes = [8, 20], strides = [1, 1]} : vector<8x160xf32> to vector<8x20xf32>
    %178 = arith.maximumf %176, %177 : vector<8x20xf32>
    %c0_131 = arith.constant 0 : index
    %c0_132 = arith.constant 0 : index
    %179 = vector.load %arg11[%c0_131, %c0_132] : memref<8x80xf32, #tpu.memory_space<vmem>>, vector<8x20xf32>
    tpu.vector_store %arg11[%c0_131, %c0_132], %178 {strides = array<i32>} : memref<8x80xf32, #tpu.memory_space<vmem>>, vector<8x20xf32>,
    %180 = vector.extract_strided_slice %175 {offsets = [0, 40], sizes = [8, 20], strides = [1, 1]} : vector<8x160xf32> to vector<8x20xf32>
    %181 = vector.extract_strided_slice %175 {offsets = [0, 60], sizes = [8, 20], strides = [1, 1]} : vector<8x160xf32> to vector<8x20xf32>
    %182 = arith.maximumf %180, %181 : vector<8x20xf32>
    %c0_133 = arith.constant 0 : index
    %c20_134 = arith.constant 20 : index
    %183 = vector.load %arg11[%c0_133, %c20_134] : memref<8x80xf32, #tpu.memory_space<vmem>>, vector<8x20xf32>
    tpu.vector_store %arg11[%c0_133, %c20_134], %182 {strides = array<i32>} : memref<8x80xf32, #tpu.memory_space<vmem>>, vector<8x20xf32>,
    %184 = vector.extract_strided_slice %175 {offsets = [0, 80], sizes = [8, 20], strides = [1, 1]} : vector<8x160xf32> to vector<8x20xf32>
    %185 = vector.extract_strided_slice %175 {offsets = [0, 100], sizes = [8, 20], strides = [1, 1]} : vector<8x160xf32> to vector<8x20xf32>
    %186 = arith.maximumf %184, %185 : vector<8x20xf32>
    %c0_135 = arith.constant 0 : index
    %c40_136 = arith.constant 40 : index
    %187 = vector.load %arg11[%c0_135, %c40_136] : memref<8x80xf32, #tpu.memory_space<vmem>>, vector<8x20xf32>
    tpu.vector_store %arg11[%c0_135, %c40_136], %186 {strides = array<i32>} : memref<8x80xf32, #tpu.memory_space<vmem>>, vector<8x20xf32>,
    %188 = vector.extract_strided_slice %175 {offsets = [0, 120], sizes = [8, 20], strides = [1, 1]} : vector<8x160xf32> to vector<8x20xf32>
    %189 = vector.extract_strided_slice %175 {offsets = [0, 140], sizes = [8, 20], strides = [1, 1]} : vector<8x160xf32> to vector<8x20xf32>
    %190 = arith.maximumf %188, %189 : vector<8x20xf32>
    %c0_137 = arith.constant 0 : index
    %c60_138 = arith.constant 60 : index
    %191 = vector.load %arg11[%c0_137, %c60_138] : memref<8x80xf32, #tpu.memory_space<vmem>>, vector<8x20xf32>
    tpu.vector_store %arg11[%c0_137, %c60_138], %190 {strides = array<i32>} : memref<8x80xf32, #tpu.memory_space<vmem>>, vector<8x20xf32>,
    %c0_139 = arith.constant 0 : index
    %c0_140 = arith.constant 0 : index
    %192 = vector.load %arg11[%c0_139, %c0_140] : memref<8x80xf32, #tpu.memory_space<vmem>>, vector<1x80xf32>
    %c1_141 = arith.constant 1 : index
    %c0_142 = arith.constant 0 : index
    %193 = vector.load %arg11[%c1_141, %c0_142] : memref<8x80xf32, #tpu.memory_space<vmem>>, vector<1x80xf32>
    %194 = arith.maximumf %192, %193 : vector<1x80xf32>
    %cst_143 = arith.constant 0.000000e+00 : f32
    %195 = vector.broadcast %cst_143 : f32 to vector<1x80xf32>
    %196 = arith.maximumf %194, %195 : vector<1x80xf32>
    %c0_144 = arith.constant 0 : index
    %c0_145 = arith.constant 0 : index
    %197 = vector.load %arg12[%c0_144, %c0_145] : memref<1x320xf32, #tpu.memory_space<vmem>>, vector<1x80xf32>
    tpu.vector_store %arg12[%c0_144, %c0_145], %196 {strides = array<i32>} : memref<1x320xf32, #tpu.memory_space<vmem>>, vector<1x80xf32>,
    %c2_146 = arith.constant 2 : index
    %c0_147 = arith.constant 0 : index
    %198 = vector.load %arg11[%c2_146, %c0_147] : memref<8x80xf32, #tpu.memory_space<vmem>>, vector<1x80xf32>
    %c3_148 = arith.constant 3 : index
    %c0_149 = arith.constant 0 : index
    %199 = vector.load %arg11[%c3_148, %c0_149] : memref<8x80xf32, #tpu.memory_space<vmem>>, vector<1x80xf32>
    %200 = arith.maximumf %198, %199 : vector<1x80xf32>
    %cst_150 = arith.constant 0.000000e+00 : f32
    %201 = vector.broadcast %cst_150 : f32 to vector<1x80xf32>
    %202 = arith.maximumf %200, %201 : vector<1x80xf32>
    %c0_151 = arith.constant 0 : index
    %c80_152 = arith.constant 80 : index
    %203 = vector.load %arg12[%c0_151, %c80_152] : memref<1x320xf32, #tpu.memory_space<vmem>>, vector<1x80xf32>
    tpu.vector_store %arg12[%c0_151, %c80_152], %202 {strides = array<i32>} : memref<1x320xf32, #tpu.memory_space<vmem>>, vector<1x80xf32>,
    %c4_153 = arith.constant 4 : index
    %c0_154 = arith.constant 0 : index
    %204 = vector.load %arg11[%c4_153, %c0_154] : memref<8x80xf32, #tpu.memory_space<vmem>>, vector<1x80xf32>
    %c5_155 = arith.constant 5 : index
    %c0_156 = arith.constant 0 : index
    %205 = vector.load %arg11[%c5_155, %c0_156] : memref<8x80xf32, #tpu.memory_space<vmem>>, vector<1x80xf32>
    %206 = arith.maximumf %204, %205 : vector<1x80xf32>
    %cst_157 = arith.constant 0.000000e+00 : f32
    %207 = vector.broadcast %cst_157 : f32 to vector<1x80xf32>
    %208 = arith.maximumf %206, %207 : vector<1x80xf32>
    %c0_158 = arith.constant 0 : index
    %c160 = arith.constant 160 : index
    %209 = vector.load %arg12[%c0_158, %c160] : memref<1x320xf32, #tpu.memory_space<vmem>>, vector<1x80xf32>
    tpu.vector_store %arg12[%c0_158, %c160], %208 {strides = array<i32>} : memref<1x320xf32, #tpu.memory_space<vmem>>, vector<1x80xf32>,
    %c6_159 = arith.constant 6 : index
    %c0_160 = arith.constant 0 : index
    %210 = vector.load %arg11[%c6_159, %c0_160] : memref<8x80xf32, #tpu.memory_space<vmem>>, vector<1x80xf32>
    %c7_161 = arith.constant 7 : index
    %c0_162 = arith.constant 0 : index
    %211 = vector.load %arg11[%c7_161, %c0_162] : memref<8x80xf32, #tpu.memory_space<vmem>>, vector<1x80xf32>
    %212 = arith.maximumf %210, %211 : vector<1x80xf32>
    %cst_163 = arith.constant 0.000000e+00 : f32
    %213 = vector.broadcast %cst_163 : f32 to vector<1x80xf32>
    %214 = arith.maximumf %212, %213 : vector<1x80xf32>
    %c0_164 = arith.constant 0 : index
    %c240 = arith.constant 240 : index
    %215 = vector.load %arg12[%c0_164, %c240] : memref<1x320xf32, #tpu.memory_space<vmem>>, vector<1x80xf32>
    tpu.vector_store %arg12[%c0_164, %c240], %214 {strides = array<i32>} : memref<1x320xf32, #tpu.memory_space<vmem>>, vector<1x80xf32>,
    %c0_165 = arith.constant 0 : index
    %c0_166 = arith.constant 0 : index
    %216 = vector.load %arg12[%c0_165, %c0_166] : memref<1x320xf32, #tpu.memory_space<vmem>>, vector<1x320xf32>
    %c0_167 = arith.constant 0 : index
    %c0_168 = arith.constant 0 : index
    %217 = vector.load %arg6[%c0_167, %c0_168] : memref<320x10xf32, #tpu.memory_space<vmem>>, vector<320x10xf32>
    %cst_169 = arith.constant dense<0.000000e+00> : vector<1x10xf32>
    %218 = tpu.matmul %216, %217, %cst_169 {dimension_numbers = #tpu.dot_dimension_numbers<[1], [0], [0], [1], [0, 0, 1, 1], [], []>} : vector<1x320xf32>, vector<320x10xf32>, vector<1x10xf32> -> vector<1x10xf32>
    %c0_170 = arith.constant 0 : index
    %c0_171 = arith.constant 0 : index
    %219 = vector.load %arg7[%c0_170, %c0_171] : memref<1x10xf32, #tpu.memory_space<vmem>>, vector<1x10xf32>
    %220 = arith.addf %218, %219 : vector<1x10xf32>
    %cst_172 = arith.constant dense<0xFF800000> : vector<1xf32>
    %221 = vector.multi_reduction <maximumf>, %220, %cst_172 [1] : vector<1x10xf32> to vector<1xf32>
    %222 = vector.shape_cast %221 : vector<1xf32> to vector<1x1xf32>
    %223 = vector.broadcast %222 : vector<1x1xf32> to vector<1x10xf32>
    %224 = arith.subf %220, %223 : vector<1x10xf32>
    %225 = math.exp %224 : vector<1x10xf32>
    %cst_173 = arith.constant dense<0.000000e+00> : vector<1xf32>
    %226 = vector.multi_reduction <add>, %225, %cst_173 [1] : vector<1x10xf32> to vector<1xf32>
    %227 = vector.shape_cast %226 : vector<1xf32> to vector<1x1xf32>
    %228 = math.log %227 : vector<1x1xf32>
    %229 = vector.broadcast %228 : vector<1x1xf32> to vector<1x10xf32>
    %230 = arith.subf %224, %229 : vector<1x10xf32>
    %c0_174 = arith.constant 0 : index
    %c0_175 = arith.constant 0 : index
    %c0_176 = arith.constant 0 : index
    %231 = vector.load %arg8[%c0_174, %c0_175, %c0_176] : memref<1x1x10xf32, #tpu.memory_space<vmem>>, vector<1x1x10xf32>
    %232 = vector.shape_cast %231 : vector<1x1x10xf32> to vector<1x10xf32>
    %233 = vector.shape_cast %230 : vector<1x10xf32> to vector<1x1x10xf32>
    tpu.vector_store %arg8[%c0_174, %c0_175, %c0_176], %233 {strides = array<i32>} : memref<1x1x10xf32, #tpu.memory_space<vmem>>, vector<1x1x10xf32>,
    return
  }
  func.func @transform_0(%arg0: i32) -> (i32, i32, i32) {
    %c0_i32 = arith.constant 0 : i32
    %c0_i32_0 = arith.constant 0 : i32
    %c0_i32_1 = arith.constant 0 : i32
    return %arg0, %c0_i32, %c0_i32_0 : i32, i32, i32
  }
  func.func @transform_1(%arg0: i32) -> (i32, i32, i32) {
    %c0_i32 = arith.constant 0 : i32
    %c0_i32_0 = arith.constant 0 : i32
    %c0_i32_1 = arith.constant 0 : i32
    %c0_i32_2 = arith.constant 0 : i32
    return %c0_i32, %c0_i32_0, %c0_i32_1 : i32, i32, i32
  }
  func.func @transform_2(%arg0: i32) -> (i32, i32) {
    %c0_i32 = arith.constant 0 : i32
    %c0_i32_0 = arith.constant 0 : i32
    %c0_i32_1 = arith.constant 0 : i32
    return %c0_i32, %c0_i32_0 : i32, i32
  }
  func.func @transform_3(%arg0: i32) -> (i32, i32, i32) {
    %c0_i32 = arith.constant 0 : i32
    %c0_i32_0 = arith.constant 0 : i32
    %c0_i32_1 = arith.constant 0 : i32
    %c0_i32_2 = arith.constant 0 : i32
    return %c0_i32, %c0_i32_0, %c0_i32_1 : i32, i32, i32
  }
  func.func @transform_4(%arg0: i32) -> (i32, i32) {
    %c0_i32 = arith.constant 0 : i32
    %c0_i32_0 = arith.constant 0 : i32
    %c0_i32_1 = arith.constant 0 : i32
    return %c0_i32, %c0_i32_0 : i32, i32
  }
  func.func @transform_5(%arg0: i32) -> (i32, i32) {
    %c0_i32 = arith.constant 0 : i32
    %c0_i32_0 = arith.constant 0 : i32
    %c0_i32_1 = arith.constant 0 : i32
    return %c0_i32, %c0_i32_0 : i32, i32
  }
  func.func @transform_6(%arg0: i32) -> (i32, i32) {
    %c0_i32 = arith.constant 0 : i32
    %c0_i32_0 = arith.constant 0 : i32
    %c0_i32_1 = arith.constant 0 : i32
    return %c0_i32, %c0_i32_0 : i32, i32
  }
  func.func @transform_7(%arg0: i32) -> (i32, i32, i32) {
    %c0_i32 = arith.constant 0 : i32
    %c0_i32_0 = arith.constant 0 : i32
    %c0_i32_1 = arith.constant 0 : i32
    return %arg0, %c0_i32, %c0_i32_0 : i32, i32, i32
  }
}

</mosaic_0001>

<bundles_post_ra>
// kernel: net_forward.1
= control target key start
LH: loop header
LB: loop body
LE: loop exit
PB: predicated region body
PF: predicated region fallthrough
CT: control target
= control target key end

     0   :  { %12 = vsyncpa [#allocation7], 0  ;;  %s3585_s0 = inlined_call_operand.vmem [shape: f32[2,28,28], index: 0, kind: input, shape index: {}]   ;;  %s3586_s1 = inlined_call_operand.vmem [shape: f32[5,28,240], index: 1, kind: input, shape index: {}]   ;;  %s3587_s2 = inlined_call_operand.vmem [shape: f32[1,240], index: 2, kind: input, shape index: {}]   ;;  %s3588_s3 = inlined_call_operand.vmem [shape: f32[5,120,160], index: 3, kind: input, shape index: {}]   ;;  %s3589_s4 = inlined_call_operand.vmem [shape: f32[1,160], index: 4, kind: input, shape index: {}]   ;;  %s3590_s5 = inlined_call_operand.vmem [shape: f32[320,10], index: 5, kind: input, shape index: {}]   ;;  %s3591_s6 = inlined_call_operand.vmem [shape: f32[1,10], index: 6, kind: input, shape index: {}]   ;;  %s3592_s7 = inlined_call_operand.hbm [shape: f32[2,1,10], index: 7, kind: output, shape index: {}]  }
   0x1   :  { %14 = vsyncpa [#allocation7 + $0x1], 0  ;;  %s2527_s24 = smov 0   ;;  %s2529_s25 = smov 0  }
   0x2   :  { %s2531_s26 = smov 0   ;;  %s2533_s27 = smov 0  }
   0x3 LB: > { %s2548_s28 = sadd.s32 4294967295, %s2467_s27   ;;  %s2091_s29 = sadd.s32 4294967294, %s2467_s27   ;;  %s2467_s27 = sphi %s2533_s27, %s3622_s27   ;;  %s2463_s26 = sphi %s2531_s26, %s3621_s26   ;;  %s2459_s25 = sphi %s2529_s25, %s3620_s25   ;;  %s2455_s24 = sphi %s2527_s24, %s3619_s24  }
   0x4   : > { %s2552_s30 = sadd.s32 1, %s2467_s27   ;;  %s179_s8 = sadd.s32 1, %s2463_s26 }
   0x5   : > { %s176_s9 = ssub.s32 %s2467_s27, %s2552_s30  ;;  %p189_p0 = scmp.ne.s32.totalorder %s2463_s26, %s2459_s25 }
   0x6   : > { %p177_p1 = scmp.eq.s32.totalorder %s176_s9, 0  ;;  %p190_p2 = scmp.eq.s32.totalorder %s2548_s28, 1 }
   0x7   : > { %p195_p3 = scmp.ne.s32.totalorder %s2459_s25, %s2455_s24  ;;  %p196_p4 = scmp.eq.s32.totalorder %s2091_s29, 1 }
   0x8   : > { %s2563_s10 = scalar_select %p177_p1, %s2463_s26, %s179_s8  }
   0x9   : > { %p2565_p5 = por %p190_p2, %p189_p0  ;;  %p2569_p6 = por %p196_p4, %p195_p3 }
   0xa   : > { %p2094_p7 = scmp.ge.s32.totalorder %s2467_s27, 1  ;;  %p240_p8 = scmp.lt.s32.totalorder %s2467_s27, 3 }
   0xc   : > { %p241_p9 = pnand %p2094_p7, %p240_p8 }
   0xd   : > { %p271_p10 = scmp.lt.s32.totalorder (!%p241_p9), %s2548_s28, 1  ;;  %s2470_s16 = smov (!%p241_p9), 118  }
   0xe   : > { %244 = sbr.rel (%p241_p9) target bundleno = 1746 (0x6d2), region = 48  ;;  %s2471_s17 = smov (!%p241_p9), 108  }
   0xf   : > { %s2473_s19 = smov (!%p241_p9), 88   ;;  %s2474_s20 = smov (!%p241_p9), 78  }
  0x10   : > { %s3598_s21 = smov (!%p241_p9), 68   ;;  %s3595_s22 = smov (!%p241_p9), 58  }
  0x11   : > { %s3596_s29 = smov (!%p241_p9), 38   ;;  %s3600_s9 = smov (!%p241_p9), 28  }
  0x12   : > { %s3603_s13 = smov (!%p241_p9), 68   ;;  %s3604_s14 = smov (!%p241_p9), 48  }
  0x13   : > { %v2104_v0 = vld [vmem:[%s3586_s1 + $0x78] sm:$0xf]  ;;  %vm316_vm0 = vcmask 1043456   ;;  %v2103_v1 = vld [vmem:[%s3586_s1 + $0x70] sm:$0xf]  ;;  %v2102_v2 = vld [vmem:[%s3586_s1 + $0x68] sm:$0xff] }
  0x14   : > { %2105 = vmatprep.subr.msk.mxu0 %vm316_vm0, %v2104_v0  ;;  %v287_v3 = vld [vmem:[%s3586_s1 + $0x38] sm:$0xf]  ;;  %v286_v4 = vld [vmem:[%s3586_s1 + $0x30] sm:$0xf]  ;;  %v2101_v5 = vld [vmem:[%s3586_s1 + $0x60] sm:$0xff]  ;;  %s272_s8 = scalar_select %p271_p10, %s2548_s28, 1 }
  0x15   : > { %2106 = vmatpush1.msk.msra.mxu0 %vm316_vm0, %v2103_v1  ;;  %2110 = vmatprep.subr.msk.mxu1 %vm316_vm0, %v287_v3  ;;  %v285_v6 = vld [vmem:[%s3586_s1 + $0x28] sm:$0xff]  ;;  %v2100_v7 = vld [vmem:[%s3586_s1 + $0x58] sm:$0xff]  ;;  %v284_v8 = vld [vmem:[%s3586_s1 + $0x20] sm:$0xff]  ;;  %vm301_vm1 = vcmask 1046528   ;;  %vm309_vm2 = vcmask 228352   ;;  %v2469_v21 = vmov 0.0  }
  0x16   : > { %349 = vmatprep.subr.mxu0 %v2102_v2  ;;  %2111 = vmatpush1.msk.msra.mxu1 %vm316_vm0, %v286_v4  ;;  %v2099_v9 = vld [vmem:[%s3586_s1 + $0x50] sm:$0xff]  ;;  %v283_v10 = vld [vmem:[%s3586_s1 + $0x18] sm:$0xff]  ;;  %v2098_v11 = vld [vmem:[%s3586_s1 + $0x48] sm:$0xff]  ;;  %s2283_s18 = sshll.u32 %s272_s8, 5  ;;  %vm510_vm3 = vcmask 1045504   ;;  %vm628_vm4 = vcmask 1044480  }
  0x17   : > { %350 = vmatpush1.msra.mxu0 %v2101_v5  ;;  %444 = vmatprep.subr.mxu1 %v285_v6  ;;  %v282_v12 = vld [vmem:[%s3586_s1 + $0x10] sm:$0xff]  ;;  %v2097_v13 = vld [vmem:[%s3586_s1 + $0x40] sm:$0xff]  ;;  %v281_v14 = vld [vmem:[%s3586_s1 + $0x8] sm:$0xff]  ;;  %s275_s23 = scalar_lea.vmem %s3585_s0, %s2283_s18  ;;  %vm887_vm5 = vcmask 80896   ;;  %s2472_s18 = smov 98   ;;  %vm903_vm6 = vcmask 162896  }
  0x18   : > { %351 = vmatprep.subr.mxu0 %v2100_v7  ;;  %445 = vmatpush1.msra.mxu1 %v284_v8  ;;  %v280_v15 = vld [vmem:[%s3586_s1] sm:$0xff]  ;;  %v2122_v16 = vld [vmem:[%s3586_s1 + $0xb8] sm:$0xf]  ;;  %v2640_v19 = vld [vmem:[%s275_s23 + $0x8] sm:$0xff]  ;;  %s3593_s8 = smov 18   ;;  %s3607_s15 = smov 38  }
  0x19   : > { %352 = vmatpush1.msra.mxu0 %v2099_v9  ;;  %446 = vmatprep.subr.mxu1 %v283_v10  ;;  %v2135_v17 = vld [vmem:[%s3586_s1 + $0xf8] sm:$0xf]  ;;  %v2638_v18 = vld [vmem:[%s275_s23] sm:$0xff]  ;;  %v2642_v20 = vld [vmem:[%s275_s23 + $0x10] sm:$0xff]  ;;  %v303_v23 = vrot.slane %v2640_v19, 1  ;;  %v512_v40 = vrot.slane %v2640_v19, 2 }
  0x1a   : > { %353 = vmatprep.subr.mxu0 %v2098_v11  ;;  %447 = vmatpush1.msra.mxu1 %v282_v12  ;;  %v302_v22 = vrot.slane %v2638_v18, 1  ;;  %v305_v24 = vrot.slane %v2642_v20, 1  ;;  %v2121_v25 = vld [vmem:[%s3586_s1 + $0xb0] sm:$0xf]  ;;  %v2653_v26 = vld [vmem:[%s275_s23 + $0x18] sm:$0xf] }
  0x1b   : > { %354 = vmatpush1.msra.mxu0 %v2097_v13  ;;  %448 = vmatprep.subr.mxu1 %v281_v14  ;;  %v2120_v28 = vld [vmem:[%s3586_s1 + $0xa8] sm:$0xff]  ;;  %v2134_v29 = vld [vmem:[%s3586_s1 + $0xf0] sm:$0xf]  ;;  %v2119_v30 = vld [vmem:[%s3586_s1 + $0xa0] sm:$0xff]  ;;  %v307_v33 = vrot.slane %v2653_v26, 1  ;;  %v511_v39 = vrot.slane %v2638_v18, 2 }
  0x1c   : > { %387 = vmatprep.mubr.f32.mxu0 %v2469_v21  ;;  %449 = vmatpush1.msra.mxu1 %v280_v15  ;;  %v304_v27 = vsel %vm301_vm1, %v302_v22, %v303_v23  ;;  %v306_v31 = vsel %vm301_vm1, %v303_v23, %v305_v24  ;;  %v2118_v32 = vld [vmem:[%s3586_s1 + $0x98] sm:$0xff]  ;;  %v2117_v34 = vld [vmem:[%s3586_s1 + $0x90] sm:$0xff]  ;;  %v2116_v35 = vld [vmem:[%s3586_s1 + $0x88] sm:$0xff]  ;;  %v629_v44 = vrot.slane %v2638_v18, 3  ;;  %v630_v45 = vrot.slane %v2640_v19, 3  ;;  %s3597_s23 = smov 48  }
  0x1d   : > { %482 = vmatprep.mubr.f32.mxu1 %v2469_v21  ;;  %2123 = vmatprep.subr.msk.mxu0 %vm316_vm0, %v2122_v16  ;;  %v2133_v36 = vld [vmem:[%s3586_s1 + $0xe8] sm:$0xff]  ;;  %v308_v37 = vsel %vm301_vm1, %v305_v24, %v307_v33  ;;  %v2132_v38 = vld [vmem:[%s3586_s1 + $0xe0] sm:$0xff]  ;;  %v2131_v42 = vld [vmem:[%s3586_s1 + $0xd8] sm:$0xff]  ;;  %v513_v48 = vsel %vm510_vm3, %v511_v39, %v512_v40  ;;  %v514_v50 = vrot.slane %v2642_v20, 2  ;;  %v632_v54 = vrot.slane %v2642_v20, 3 }
  0x1e   : > { %2112 = vmatmul.mubr.msk.f32.vlgmr.msra.gmra.mxu1 %vm309_vm2, %v2638_v18  ;;  %2136 = vmatprep.subr.msk.mxu1 %vm316_vm0, %v2135_v17  ;;  %v2115_v41 = vld [vmem:[%s3586_s1 + $0x80] sm:$0xff]  ;;  %v2130_v43 = vld [vmem:[%s3586_s1 + $0xd0] sm:$0xff]  ;;  %v2148_v46 = vld [vmem:[%s3586_s1 + $0x138] sm:$0xf]  ;;  %v631_v52 = vsel %vm628_vm4, %v629_v44, %v630_v45  ;;  %v516_v57 = vrot.slane %v2653_v26, 2  ;;  %v634_v61 = vrot.slane %v2653_v26, 3 }
  0x1f   : > { %2107 = vmatmul.mubr.msk.f32.vlgmr.msra.gmra.mxu0 %vm309_vm2, %v304_v27  ;;  %488 = vmatprep.mubr.f32.mxu1 %v2469_v21  ;;  %v2129_v47 = vld [vmem:[%s3586_s1 + $0xc8] sm:$0xff]  ;;  %v2128_v49 = vld [vmem:[%s3586_s1 + $0xc0] sm:$0xff]  ;;  %v2147_v51 = vld [vmem:[%s3586_s1 + $0x130] sm:$0xf]  ;;  %v515_v56 = vsel %vm510_vm3, %v512_v40, %v514_v50  ;;  %v633_v59 = vsel %vm628_vm4, %v630_v45, %v632_v54  ;;  %v746_v0 = vrot.slane %v2638_v18, 4  ;;  %v747_v1 = vrot.slane %v2640_v19, 4 }
  0x20   : > { %2124 = vmatpush1.msk.msra.mxu0 %vm316_vm0, %v2121_v25  ;;  %393 = vmatprep.mubr.f32.mxu0 %v2469_v21  ;;  %v2146_v53 = vld [vmem:[%s3586_s1 + $0x128] sm:$0xff]  ;;  %v2145_v55 = vld [vmem:[%s3586_s1 + $0x120] sm:$0xff]  ;;  %v2144_v58 = vld [vmem:[%s3586_s1 + $0x118] sm:$0xff]  ;;  %v517_v63 = vsel %vm510_vm3, %v514_v50, %v516_v57  ;;  %v635_v3 = vsel %vm628_vm4, %v632_v54, %v634_v61  ;;  %v749_v5 = vrot.slane %v2642_v20, 4  ;;  %v751_v7 = vrot.slane %v2653_v26, 4 }
  0x21   : > { %556 = vmatprep.subr.mxu0 %v2120_v28  ;;  %2137 = vmatpush1.msk.msra.mxu1 %vm316_vm0, %v2134_v29  ;;  %v2143_v60 = vld [vmem:[%s3586_s1 + $0x110] sm:$0xff]  ;;  %v2142_v62 = vld [vmem:[%s3586_s1 + $0x108] sm:$0xff]  ;;  %v2141_v2 = vld [vmem:[%s3586_s1 + $0x100] sm:$0xff]  ;;  %v748_v4 = vsel %vm316_vm0, %v746_v0, %v747_v1  ;;  %vm916_vm7 = vcmask 244896   ;;  %vm929_vm8 = vcmask 326896   ;;  %vm942_vm9 = vcmask 408896  }
  0x22   : > { %557 = vmatpush1.msra.mxu0 %v2119_v30  ;;  %2113 = vmatmul.mubr.msk.f32.gmra.mxu1 %vm309_vm2, %v2640_v19  ;;  %v750_v6 = vsel %vm316_vm0, %v747_v1, %v749_v5  ;;  %v752_v8 = vsel %vm316_vm0, %v749_v5, %v751_v7  ;;  %vm955_vm10 = vcmask 490896   ;;  %vm995_vm11 = vcmask 556032  }
  0x23   : > { %2108 = vmatmul.mubr.msk.f32.gmra.mxu0 %vm309_vm2, %v306_v31  ;;  %558 = vmatprep.subr.mxu0 %v2118_v32  ;;  %vm1002_vm12 = vcmask 572896   ;;  %vm1015_vm13 = vcmask 654896   ;;  %vm1028_vm14 = vcmask 736896   ;;  %vm1041_vm15 = vcmask 818896  }
  0x24   : > { %559 = vmatpush1.msra.mxu0 %v2117_v34  ;;  %399 = vmatprep.mubr.f32.mxu0 %v2469_v21  ;;  %vm1067_vm1 = vcmask 982896   ;;  %vm1195_vm3 = vcmask 982016   ;;  %vm1687_vm4 = vcmask 162816  }
  0x25   : > { %494 = vmatprep.mubr.f32.mxu1 %v2469_v21  ;;  %560 = vmatprep.subr.mxu0 %v2116_v35 }
  0x26   : > { %2114 = vmatmul.mubr.msk.f32.gmra.mxu1 %vm309_vm2, %v2642_v20  ;;  %674 = vmatprep.subr.mxu1 %v2133_v36  ;;  %v856_v20 = vlaneseq  ;;  %v854_v36 = vld [vmem:[%s3587_s2] sm:$0x3] }
  0x27   : > { %2109 = vmatmul.mubr.msk.f32.gmra.mxu0 %vm309_vm2, %v308_v37  ;;  %675 = vmatpush1.msra.mxu1 %v2132_v38 }
  0x28   : > { %561 = vmatpush1.msra.mxu0 %v2115_v41  ;;  %676 = vmatprep.subr.mxu1 %v2131_v42  ;;  %v2782_v26 = vshrl.u32 %v856_v20, 7 }
  0x29   : > { %594 = vmatprep.mubr.f32.mxu0 %v2469_v21  ;;  %677 = vmatpush1.msra.mxu1 %v2130_v43 }
  0x2a   : > { %2149 = vmatprep.subr.msk.mxu0 %vm316_vm0, %v2148_v46  ;;  %678 = vmatprep.subr.mxu1 %v2129_v47  ;;  %v2785_v34 = vsub.s32 0, %v2782_v26  ;;  %v2791_v37 = vsub.s32 1, %v2782_v26 }
  0x2b   : > { %2125 = vmatmul.mubr.msk.f32.vlgmr.msra.gmra.mxu0 %vm309_vm2, %v513_v48  ;;  %679 = vmatpush1.msra.mxu1 %v2128_v49 }
  0x2c   : > { %2150 = vmatpush1.msk.msra.mxu0 %vm316_vm0, %v2147_v51  ;;  %712 = vmatprep.mubr.f32.mxu1 %v2469_v21  ;;  %v859_v45 = vrot.slane %v854_v36, %v2785_v34  ;;  %v863_v47 = vrot.slane %v854_v36, %v2791_v37  ;;  %v1159_v36 = vld [vmem:[%s3588_s3 + $0xd0] sm:$0xff]  ;;  %vm1054_vm0 = vcmask 900896  }
  0x2d   : > { %2138 = vmatmul.mubr.msk.f32.vlgmr.msra.gmra.mxu1 %vm309_vm2, %v631_v52  ;;  %791 = vmatprep.subr.mxu0 %v2146_v53 }
  0x2e   : > { %600 = vmatprep.mubr.f32.mxu0 %v2469_v21  ;;  %792 = vmatpush1.msra.mxu0 %v2145_v55 }
  0x2f   : > { %2126 = vmatmul.mubr.msk.f32.gmra.mxu0 %vm309_vm2, %v515_v56  ;;  %718 = vmatprep.mubr.f32.mxu1 %v2469_v21 }
  0x30   : > { %793 = vmatprep.subr.mxu0 %v2144_v58  ;;  %606 = vmatprep.mubr.f32.mxu0 %v2469_v21 }
  0x31   : > { %2139 = vmatmul.mubr.msk.f32.gmra.mxu1 %vm309_vm2, %v633_v59  ;;  %794 = vmatpush1.msra.mxu0 %v2143_v60 }
  0x32   : > { %795 = vmatprep.subr.mxu0 %v2142_v62  ;;  %724 = vmatprep.mubr.f32.mxu1 %v2469_v21 }
  0x33   : > { %2127 = vmatmul.mubr.msk.f32.gmra.mxu0 %vm309_vm2, %v517_v63 }
  0x34   : > { %796 = vmatpush1.msra.mxu0 %v2141_v2  ;;  %829 = vmatprep.mubr.f32.mxu0 %v2469_v21 }
  0x35   : > { %2140 = vmatmul.mubr.msk.f32.gmra.mxu1 %vm309_vm2, %v635_v3 }
  0x36   : > { %1263 = vmatprep.mubr.f32.mxu1 %v2469_v21 }
  0x37   : > { %2151 = vmatmul.mubr.msk.f32.vlgmr.msra.gmra.mxu0 %vm309_vm2, %v748_v4 }
  0x38   : > { %835 = vmatprep.mubr.f32.mxu0 %v2469_v21 }
  0x3b   : > { %2152 = vmatmul.mubr.msk.f32.gmra.mxu0 %vm309_vm2, %v750_v6 }
  0x3c   : > { %841 = vmatprep.mubr.f32.mxu0 %v2469_v21 }
  0x3f   : > { %2153 = vmatmul.mubr.msk.f32.gmra.mxu0 %vm309_vm2, %v752_v8  ;;  %vm1075_vm2 = vcmask 974848  }
  0x40   : > { %1337 = vmatprep.mubr.f32.mxu0 %v2469_v21 }
  0xde   : > { %v484_v9 = vpop.f32.mrf.mxu1 }
  0xdf   : > { %v389_v10 = vpop.f32.mrf.mxu0 }
  0xe0   : > { %v486_v11 = vpop.f32.mrf.mxu1  ;;  %v485_v29 = vadd.f32 %v484_v9, %v389_v10 }
  0xe1   : > { %v391_v12 = vpop.f32.mrf.mxu0 }
  0xe2   : > { %v490_v13 = vpop.f32.mrf.mxu1  ;;  %v487_v32 = vadd.f32 %v486_v11, %v391_v12 }
  0xe3   : > { %v395_v14 = vpop.f32.mrf.mxu0 }
  0xe4   : > { %v492_v15 = vpop.f32.mrf.mxu1  ;;  %v491_v38 = vadd.f32 %v490_v13, %v395_v14 }
  0xe5   : > { %v397_v16 = vpop.f32.mrf.mxu0 }
  0xe6   : > { %v496_v18 = vpop.f32.mrf.mxu1  ;;  %v493_v42 = vadd.f32 %v492_v15, %v397_v16 }
  0xe7   : > { %v401_v17 = vpop.f32.mrf.mxu0 }
  0xe8   : > { %v498_v22 = vpop.f32.mrf.mxu1  ;;  %v497_v48 = vadd.f32 %v496_v18, %v401_v17 }
  0xe9   : > { %v403_v19 = vpop.f32.mrf.mxu0 }
  0xea   : > { %v499_v52 = vadd.f32 %v498_v22, %v403_v19 }
  0xeb   : > { %v596_v23 = vpop.f32.mrf.mxu0 }
  0xec   : > { %v613_v33 = vadd.f32 %v596_v23, %v485_v29  ;;  %v1162_v29 = vld [vmem:[%s3588_s3 + $0xe8] sm:$0xff] }
  0xed   : > { %v598_v24 = vpop.f32.mrf.mxu0  ;;  %v714_v25 = vpop.f32.mrf.mxu1  ;;  %1275 = vmatprep.subr.mxu0 %v1162_v29  ;;  %v1134_v29 = vld [vmem:[%s3588_s3 + $0x8] sm:$0xff] }
  0xee   : > { %v614_v39 = vadd.f32 %v598_v24, %v487_v32  ;;  %v731_v43 = vadd.f32 %v714_v25, %v613_v33  ;;  %v2181_v32 = vld [vmem:[%s3588_s3 + $0x1c8] sm:$0xff]  ;;  %v1160_v33 = vld [vmem:[%s3588_s3 + $0xd8] sm:$0xff] }
  0xef   : > { %v602_v27 = vpop.f32.mrf.mxu0  ;;  %v716_v28 = vpop.f32.mrf.mxu1 }
  0xf0   : > { %v615_v44 = vadd.f32 %v602_v27, %v491_v38  ;;  %v732_v49 = vadd.f32 %v716_v28, %v614_v39  ;;  %v2183_v28 = vld [vmem:[%s3588_s3 + $0x1d8] sm:$0xff]  ;;  %v1158_v39 = vld [vmem:[%s3588_s3 + $0xc8] sm:$0xff] }
  0xf1   : > { %v604_v30 = vpop.f32.mrf.mxu0  ;;  %v720_v31 = vpop.f32.mrf.mxu1  ;;  %1201 = vmatprep.subr.mxu1 %v2183_v28  ;;  %v2179_v38 = vld [vmem:[%s3588_s3 + $0x1b8] sm:$0xff] }
  0xf2   : > { %v616_v50 = vadd.f32 %v604_v30, %v493_v42  ;;  %v733_v55 = vadd.f32 %v720_v31, %v615_v44  ;;  %v2182_v30 = vld [vmem:[%s3588_s3 + $0x1d0] sm:$0xff]  ;;  %v1161_v31 = vld [vmem:[%s3588_s3 + $0xe0] sm:$0xff]  ;;  %v2177_v42 = vld [vmem:[%s3588_s3 + $0x1a8] sm:$0xff] }
  0xf3   : > { %v608_v35 = vpop.f32.mrf.mxu0  ;;  %v722_v40 = vpop.f32.mrf.mxu1  ;;  %1202 = vmatpush1.msra.mxu1 %v2182_v30  ;;  %1276 = vmatpush1.msra.mxu0 %v1161_v31  ;;  %v2155_v28 = vld [vmem:[%s3588_s3 + $0xf8] sm:$0xff]  ;;  %v2154_v30 = vld [vmem:[%s3588_s3 + $0xf0] sm:$0xff]  ;;  %v1133_v31 = vld [vmem:[%s3588_s3] sm:$0xff] }
  0xf4   : > { %v617_v56 = vadd.f32 %v608_v35, %v497_v48  ;;  %v734_v60 = vadd.f32 %v722_v40, %v616_v50  ;;  %1203 = vmatprep.subr.mxu1 %v2181_v32  ;;  %1277 = vmatprep.subr.mxu0 %v1160_v33  ;;  %v2180_v35 = vld [vmem:[%s3588_s3 + $0x1c0] sm:$0xff]  ;;  %v2178_v40 = vld [vmem:[%s3588_s3 + $0x1b0] sm:$0xff]  ;;  %v1154_v48 = vld [vmem:[%s3588_s3 + $0xa8] sm:$0xff] }
  0xf5   : > { %v610_v41 = vpop.f32.mrf.mxu0  ;;  %v726_v53 = vpop.f32.mrf.mxu1  ;;  %1204 = vmatpush1.msra.mxu1 %v2180_v35  ;;  %1278 = vmatpush1.msra.mxu0 %v1159_v36  ;;  %v2215_v32 = vld [vmem:[%s3588_s3 + $0x2c8] sm:$0xff]  ;;  %v2246_v33 = vld [vmem:[%s3588_s3 + $0x3b8] sm:$0xff] }
  0xf6   : > { %v618_v61 = vadd.f32 %v610_v41, %v499_v52  ;;  %v735_v2 = vadd.f32 %v726_v53, %v617_v56  ;;  %1205 = vmatprep.subr.mxu1 %v2179_v38  ;;  %1279 = vmatprep.subr.mxu0 %v1158_v39  ;;  %v1157_v41 = vld [vmem:[%s3588_s3 + $0xc0] sm:$0xff]  ;;  %v2173_v53 = vld [vmem:[%s3588_s3 + $0x188] sm:$0xff]  ;;  %v1151_v56 = vld [vmem:[%s3588_s3 + $0x90] sm:$0xff] }
  0xf7   : > { %v831_v46 = vpop.f32.mrf.mxu0  ;;  %v728_v0 = vpop.f32.mrf.mxu1  ;;  %1206 = vmatpush1.msra.mxu1 %v2178_v40  ;;  %1280 = vmatpush1.msra.mxu0 %v1157_v41  ;;  %v1153_v52 = vld [vmem:[%s3588_s3 + $0xa0] sm:$0xff] }
  0xf8   : > { %v848_v51 = vadd.f32 %v831_v46, %v731_v43  ;;  %v736_v6 = vadd.f32 %v728_v0, %v618_v61  ;;  %v1156_v43 = vld [vmem:[%s3588_s3 + $0xb8] sm:$0xff]  ;;  %v1155_v46 = vld [vmem:[%s3588_s3 + $0xb0] sm:$0xff]  ;;  %1207 = vmatprep.subr.mxu1 %v2177_v42  ;;  %v2169_v61 = vld [vmem:[%s3588_s3 + $0x168] sm:$0xff] }
  0xf9   : > { %v833_v54 = vpop.f32.mrf.mxu0  ;;  %1281 = vmatprep.subr.mxu0 %v1156_v43  ;;  %v1147_v0 = vld [vmem:[%s3588_s3 + $0x70] sm:$0xff] }
  0xfa   : > { %v866_v57 = vadd.f32 %v859_v45, %v848_v51  ;;  %v849_v58 = vadd.f32 %v833_v54, %v732_v49  ;;  %1282 = vmatpush1.msra.mxu0 %v1155_v46  ;;  %v2174_v51 = vld [vmem:[%s3588_s3 + $0x190] sm:$0xff]  ;;  %v1152_v54 = vld [vmem:[%s3588_s3 + $0x98] sm:$0xff] }
  0xfb   : > { %v837_v59 = vpop.f32.mrf.mxu0  ;;  %1283 = vmatprep.subr.mxu0 %v1154_v48 }
  0xfc   : > { %v850_v62 = vadd.f32 %v837_v59, %v733_v55  ;;  %875 = vrot.lane.b32.xlu0 %v866_v57, %s2470_s16  ;;  %v867_v63 = vadd.f32 %v863_v47, %v849_v58  ;;  %1284 = vmatpush1.msra.mxu0 %v1153_v52  ;;  %v2172_v55 = vld [vmem:[%s3588_s3 + $0x180] sm:$0xff]  ;;  %v1150_v58 = vld [vmem:[%s3588_s3 + $0x88] sm:$0xff]  ;;  %v2170_v59 = vld [vmem:[%s3588_s3 + $0x170] sm:$0xff] }
  0xfd   : > { %v839_v1 = vpop.f32.mrf.mxu0  ;;  %1285 = vmatprep.subr.mxu0 %v1152_v54 }
  0xfe   : > { %v868_v3 = vadd.f32 %v859_v45, %v850_v62  ;;  %v851_v4 = vadd.f32 %v839_v1, %v734_v60  ;;  %962 = vrot.lane.b32.xlu1 %v867_v63, %s2470_s16  ;;  %1286 = vmatpush1.msra.mxu0 %v1151_v56  ;;  %v1149_v60 = vld [vmem:[%s3588_s3 + $0x80] sm:$0xff]  ;;  %v1148_v62 = vld [vmem:[%s3588_s3 + $0x78] sm:$0xff] }
  0xff   : > { %v843_v5 = vpop.f32.mrf.mxu0  ;;  %1287 = vmatprep.subr.mxu0 %v1150_v58  ;;  %v2167_v1 = vld [vmem:[%s3588_s3 + $0x158] sm:$0xff] }
 0x100   : > { %v852_v7 = vadd.f32 %v843_v5, %v735_v2  ;;  %877 = vrot.lane.b32.xlu0 %v868_v3, %s2470_s16  ;;  %v869_v9 = vadd.f32 %v863_v47, %v851_v4  ;;  %1288 = vmatpush1.msra.mxu0 %v1149_v60  ;;  %v1146_v2 = vld [vmem:[%s3588_s3 + $0x68] sm:$0xff]  ;;  %v1145_v4 = vld [vmem:[%s3588_s3 + $0x60] sm:$0xff] }
 0x101   : > { %v845_v8 = vpop.f32.mrf.mxu0  ;;  %1289 = vmatprep.subr.mxu0 %v1148_v62  ;;  %v2165_v5 = vld [vmem:[%s3588_s3 + $0x148] sm:$0xff] }
 0x102   : > { %v2798_v10 = vadd.f32 %v859_v45, %v852_v7  ;;  %v853_v11 = vadd.f32 %v845_v8, %v736_v6  ;;  %v2176_v45 = vld [vmem:[%s3588_s3 + $0x1a0] sm:$0xff]  ;;  %1290 = vmatpush1.msra.mxu0 %v1147_v0  ;;  %v1144_v6 = vld [vmem:[%s3588_s3 + $0x58] sm:$0xff]  ;;  %v1143_v8 = vld [vmem:[%s3588_s3 + $0x50] sm:$0xff] }
 0x103   : > { %1208 = vmatpush1.msra.mxu1 %v2176_v45  ;;  %1291 = vmatprep.subr.mxu0 %v1146_v2  ;;  %v2164_v7 = vld [vmem:[%s3588_s3 + $0x140] sm:$0xff] }
 0x104   : > { %964 = vrot.lane.b32.xlu0 %v869_v9, %s2470_s16  ;;  %879 = vrot.lane.b32.xlu1 %v2798_v10, %s2470_s16  ;;  %v2803_v12 = vadd.f32 %v863_v47, %v853_v11  ;;  %v2175_v47 = vld [vmem:[%s3588_s3 + $0x198] sm:$0xff]  ;;  %v2162_v11 = vld [vmem:[%s3588_s3 + $0x130] sm:$0xff] }
 0x105   : > { %1209 = vmatprep.subr.mxu1 %v2175_v47  ;;  %1292 = vmatpush1.msra.mxu0 %v1145_v4 }
 0x106   : > { %1210 = vmatpush1.msra.mxu1 %v2174_v51  ;;  %1293 = vmatprep.subr.mxu0 %v1144_v6 }
 0x107   : > { %1211 = vmatprep.subr.mxu1 %v2173_v53  ;;  %1294 = vmatpush1.msra.mxu0 %v1143_v8 }
 0x108   : > { %966 = vrot.lane.b32.xlu1 %v2803_v12, %s2470_s16  ;;  %1212 = vmatpush1.msra.mxu1 %v2172_v55 }
 0x16e   : > { %v876_v13 = vpop.permute.xlu0 %875 }
 0x16f   : > { %v884_v14 = vmax.f32 %v866_v57, %v876_v13  ;;  %v2161_v13 = vld [vmem:[%s3588_s3 + $0x128] sm:$0xff] }
 0x170   : > { %v963_v15 = vpop.permute.xlu1 %962 }
 0x171   : > { %894 = vrot.lane.b32.xlu0 %v884_v14, %s2470_s16  ;;  %907 = vrot.lane.b32.xlu1 %v884_v14, %s2471_s17  ;;  %888 = vst.msk [vmem:[#allocation2] sm:$0xff] %vm887_vm5, %v884_v14  ;;  %v971_v19 = vmax.f32 %v866_v57, %v963_v15  ;;  %v972_v23 = vmax.f32 %v867_v63, %v963_v15  ;;  %v2171_v57 = vld [vmem:[%s3588_s3 + $0x178] sm:$0xff]  ;;  %v2168_v63 = vld [vmem:[%s3588_s3 + $0x160] sm:$0xff] }
 0x172   : > { %v878_v16 = vpop.permute.xlu0 %877  ;;  %1213 = vmatprep.subr.mxu1 %v2171_v57  ;;  %v2160_v15 = vld [vmem:[%s3588_s3 + $0x120] sm:$0xff] }
 0x173   : > { %v885_v17 = vmax.f32 %v868_v3, %v878_v16  ;;  %1214 = vmatpush1.msra.mxu1 %v2170_v59  ;;  %v1139_v16 = vld [vmem:[%s3588_s3 + $0x30] sm:$0xff] }
 0x174   : > { %1215 = vmatprep.subr.mxu1 %v2169_v61 }
 0x175   : > { %920 = vrot.lane.b32.xlu0 %v884_v14, %s2472_s18  ;;  %933 = vrot.lane.b32.xlu1 %v884_v14, %s2473_s19  ;;  %889 = vst.msk [vmem:[#allocation2 + $0x8] sm:$0xff] %vm887_vm5, %v885_v17 }
 0x176   : > { %v880_v18 = vpop.permute.xlu1 %879  ;;  %v965_v24 = vpop.permute.xlu0 %964  ;;  %1216 = vmatpush1.msra.mxu1 %v2168_v63 }
 0x177   : > { %v886_v22 = vmax.f32 %v2798_v10, %v880_v18  ;;  %v2827_v25 = vmax.f32 %v869_v9, %v965_v24  ;;  %v973_v27 = vmax.f32 %v868_v3, %v965_v24  ;;  %v2166_v3 = vld [vmem:[%s3588_s3 + $0x150] sm:$0xff]  ;;  %1217 = vmatprep.subr.mxu1 %v2167_v1  ;;  %v2163_v9 = vld [vmem:[%s3588_s3 + $0x138] sm:$0xff]  ;;  %v1138_v18 = vld [vmem:[%s3588_s3 + $0x28] sm:$0xff] }
 0x178   : > { %1218 = vmatpush1.msra.mxu1 %v2166_v3  ;;  %v1136_v24 = vld [vmem:[%s3588_s3 + $0x18] sm:$0xff] }
 0x179   : > { %946 = vrot.lane.b32.xlu0 %v884_v14, %s2474_s20  ;;  %983 = vrot.lane.b32.xlu1 %v971_v19, %s3598_s21  ;;  %890 = vst.msk [vmem:[#allocation2 + $0x10] sm:$0xff] %vm887_vm5, %v886_v22  ;;  %v1140_v14 = vld [vmem:[%s3588_s3 + $0x38] sm:$0xff]  ;;  %v2158_v19 = vld [vmem:[%s3588_s3 + $0x110] sm:$0xff]  ;;  %vm1693_vm5 = vcmask 326816  }
 0x17a   : > { %v967_v44 = vpop.permute.xlu1 %966  ;;  %1219 = vmatprep.subr.mxu1 %v2165_v5 }
 0x17b   : > { %v975_v49 = vmax.f32 %v2798_v10, %v967_v44  ;;  %v976_v50 = vmax.f32 %v2803_v12, %v967_v44  ;;  %v1142_v10 = vld [vmem:[%s3588_s3 + $0x48] sm:$0xff]  ;;  %v1141_v12 = vld [vmem:[%s3588_s3 + $0x40] sm:$0xff]  ;;  %1220 = vmatpush1.msra.mxu1 %v2164_v7 }
 0x17c   : > { %1221 = vmatprep.subr.mxu1 %v2163_v9  ;;  %1295 = vmatprep.subr.mxu0 %v1142_v10 }
 0x17d   : > { %985 = vrot.lane.b32.xlu0 %v972_v23, %s3598_s21  ;;  %1006 = vrot.lane.b32.xlu1 %v972_v23, %s3595_s22 }
 0x17e   : > { %1222 = vmatpush1.msra.mxu1 %v2162_v11  ;;  %1296 = vmatpush1.msra.mxu0 %v1141_v12 }
 0x17f   : > { %1223 = vmatprep.subr.mxu1 %v2161_v13  ;;  %1297 = vmatprep.subr.mxu0 %v1140_v14 }
 0x180   : > { %1224 = vmatpush1.msra.mxu1 %v2160_v15  ;;  %1298 = vmatpush1.msra.mxu0 %v1139_v16 }
 0x181   : > { %1019 = vrot.lane.b32.xlu0 %v972_v23, %s3597_s23  ;;  %1032 = vrot.lane.b32.xlu1 %v972_v23, %s3596_s29 }
 0x182   : > { %1299 = vmatprep.subr.mxu0 %v1138_v18 }
 0x185   : > { %1045 = vrot.lane.b32.xlu0 %v972_v23, %s3600_s9  ;;  %1058 = vrot.lane.b32.xlu1 %v972_v23, %s3593_s8  ;;  %s3606_s8 = smov 28   ;;  %v2157_v23 = vld [vmem:[%s3588_s3 + $0x108] sm:$0xff] }
 0x189   : > { %909 = vrot.lane.b32.xlu0 %v885_v17, %s2471_s17  ;;  %896 = vrot.lane.b32.xlu1 %v885_v17, %s2470_s16 }
 0x18d   : > { %935 = vrot.lane.b32.xlu0 %v885_v17, %s2473_s19  ;;  %922 = vrot.lane.b32.xlu1 %v885_v17, %s2472_s18 }
 0x191   : > { %989 = vrot.lane.b32.xlu0 %v2827_v25, %s3598_s21  ;;  %948 = vrot.lane.b32.xlu1 %v885_v17, %s2474_s20  ;;  %v2159_v17 = vld [vmem:[%s3588_s3 + $0x118] sm:$0xff] }
 0x192   : > { %1225 = vmatprep.subr.mxu1 %v2159_v17 }
 0x193   : > { %1226 = vmatpush1.msra.mxu1 %v2158_v19 }
 0x194   : > { %1227 = vmatprep.subr.mxu1 %v2157_v23 }
 0x195   : > { %1008 = vrot.lane.b32.xlu0 %v2827_v25, %s3595_s22  ;;  %987 = vrot.lane.b32.xlu1 %v973_v27, %s3598_s21  ;;  %s3605_s22 = smov 58   ;;  %v1135_v27 = vld [vmem:[%s3588_s3 + $0x10] sm:$0xff] }
 0x199   : > { %1034 = vrot.lane.b32.xlu0 %v2827_v25, %s3596_s29  ;;  %1021 = vrot.lane.b32.xlu1 %v2827_v25, %s3597_s23 }
 0x19d   : > { %898 = vrot.lane.b32.xlu0 %v886_v22, %s2470_s16  ;;  %1047 = vrot.lane.b32.xlu1 %v2827_v25, %s3600_s9  ;;  %s2483_s9 = smov 112   ;;  %s2484_s16 = smov 80  }
 0x1a1   : > { %924 = vrot.lane.b32.xlu0 %v886_v22, %s2472_s18  ;;  %911 = vrot.lane.b32.xlu1 %v886_v22, %s2471_s17 }
 0x1a5   : > { %950 = vrot.lane.b32.xlu0 %v886_v22, %s2474_s20  ;;  %937 = vrot.lane.b32.xlu1 %v886_v22, %s2473_s19  ;;  %s3608_s20 = smov 18   ;;  %v1137_v22 = vld [vmem:[%s3588_s3 + $0x20] sm:$0xff] }
 0x1a6   : > { %1300 = vmatpush1.msra.mxu0 %v1137_v22 }
 0x1a7   : > { %1301 = vmatprep.subr.mxu0 %v1136_v24 }
 0x1a8   : > { %1302 = vmatpush1.msra.mxu0 %v1135_v27 }
 0x1a9   : > { %993 = vrot.lane.b32.xlu0 %v976_v50, %s3603_s13  ;;  %991 = vrot.lane.b32.xlu1 %v975_v49, %s3603_s13 }
 0x1aa   : > { %1303 = vmatprep.subr.mxu0 %v1134_v29 }
 0x1ab   : > { %1304 = vmatpush1.msra.mxu0 %v1133_v31 }
 0x1ac   : > { %1489 = vmatprep.subr.mxu0 %v2246_v33 }
 0x1ad   : > { %1023 = vrot.lane.b32.xlu0 %v976_v50, %s3604_s14  ;;  %1010 = vrot.lane.b32.xlu1 %v976_v50, %s3605_s22  ;;  %s269_s14 = sand.u32 1, %s2459_s25   ;;  %s2280_s22 = sshll.u32 %s2548_s28, 4 }
 0x1ae   : > { %s270_s29 = scalar_lea.vmem [#allocation6], %s269_s14  ;;  %s2024_s23 = scalar_lea.sflag [#allocation7], %s269_s14 }
 0x1b1   : > { %1049 = vrot.lane.b32.xlu0 %v976_v50, %s3606_s8  ;;  %1036 = vrot.lane.b32.xlu1 %v976_v50, %s3607_s15  ;;  %s2485_s15 = smov 32  }
 0x1b5   : > { %1060 = vrot.lane.b32.xlu0 %v2827_v25, %s3608_s20  ;;  %1062 = vrot.lane.b32.xlu1 %v976_v50, %s3608_s20  ;;  %v2156_v25 = vld [vmem:[%s3588_s3 + $0x100] sm:$0xff]  ;;  %s2036_s20 = sshll.u32 %s270_s29, 4  ;;  %s2037_s20 = int_to_ptr.vmem [resolvable:$true] %s2036_s20 }
 0x1b6   : > { %1228 = vmatpush1.msra.mxu1 %v2156_v25 }
 0x1b7   : > { %1229 = vmatprep.subr.mxu1 %v2155_v28 }
 0x1b8   : > { %1230 = vmatpush1.msra.mxu1 %v2154_v30 }
 0x1b9   : > { %1381 = vmatprep.subr.mxu1 %v2215_v32 }
 0x1e3   : > { %v895_v35 = vpop.permute.xlu0 %894  ;;  %v908_v36 = vpop.permute.xlu1 %907 }
 0x1e4   : > { %904 = vst.msk [vmem:[#allocation2] sm:$0xff] %vm903_vm6, %v895_v35 }
 0x1e5   : > { %917 = vst.msk [vmem:[#allocation2] sm:$0xff] %vm916_vm7, %v908_v36 }
 0x1e7   : > { %v921_v38 = vpop.permute.xlu0 %920  ;;  %v934_v39 = vpop.permute.xlu1 %933 }
 0x1e8   : > { %930 = vst.msk [vmem:[#allocation2] sm:$0xff] %vm929_vm8, %v921_v38 }
 0x1e9   : > { %943 = vst.msk [vmem:[#allocation2] sm:$0xff] %vm942_vm9, %v934_v39 }
 0x1eb   : > { %v947_v40 = vpop.permute.xlu0 %946  ;;  %v984_v41 = vpop.permute.xlu1 %983 }
 0x1ec   : > { %956 = vst.msk [vmem:[#allocation2] sm:$0xff] %vm955_vm10, %v947_v40 }
 0x1ef   : > { %v986_v42 = vpop.permute.xlu0 %985  ;;  %v1007_v43 = vpop.permute.xlu1 %1006 }
 0x1f0   : > { %v996_v44 = vsel %vm995_vm11, %v984_v41, %v986_v42 }
 0x1f1   : > { %1003 = vst.msk [vmem:[#allocation2] sm:$0xff] %vm1002_vm12, %v996_v44 }
 0x1f2   : > { %1016 = vst.msk [vmem:[#allocation2] sm:$0xff] %vm1015_vm13, %v1007_v43 }
 0x1f3   : > { %v1020_v45 = vpop.permute.xlu0 %1019  ;;  %v1033_v46 = vpop.permute.xlu1 %1032 }
 0x1f4   : > { %1029 = vst.msk [vmem:[#allocation2] sm:$0xff] %vm1028_vm14, %v1020_v45 }
 0x1f5   : > { %1042 = vst.msk [vmem:[#allocation2] sm:$0xff] %vm1041_vm15, %v1033_v46 }
 0x1f7   : > { %v1046_v47 = vpop.permute.xlu0 %1045  ;;  %v1059_v48 = vpop.permute.xlu1 %1058 }
 0x1f8   : > { %1055 = vst.msk [vmem:[#allocation2] sm:$0xff] %vm1054_vm0, %v1046_v47 }
 0x1f9   : > { %1068 = vst.msk [vmem:[#allocation2] sm:$0xff] %vm1067_vm1, %v1059_v48 }
 0x1fb   : > { %v910_v49 = vpop.permute.xlu0 %909  ;;  %v897_v50 = vpop.permute.xlu1 %896 }
 0x1fc   : > { %905 = vst.msk [vmem:[#allocation2 + $0x8] sm:$0xff] %vm903_vm6, %v897_v50 }
 0x1fd   : > { %918 = vst.msk [vmem:[#allocation2 + $0x8] sm:$0xff] %vm916_vm7, %v910_v49 }
 0x1ff   : > { %v936_v51 = vpop.permute.xlu0 %935  ;;  %v923_v52 = vpop.permute.xlu1 %922 }
 0x200   : > { %v1071_v53 = vld [vmem:[#allocation2] sm:$0x1]  ;;  %v1072_v54 = vld [vmem:[#allocation2 + $0x1] sm:$0x1]  ;;  %v1077_v55 = vld [vmem:[#allocation2 + $0x2] sm:$0x1] }
 0x201   : > { %931 = vst.msk [vmem:[#allocation2 + $0x8] sm:$0xff] %vm929_vm8, %v923_v52  ;;  %v1073_v56 = vmax.f32 %v1071_v53, %v1072_v54  ;;  %v1078_v57 = vld [vmem:[#allocation2 + $0x3] sm:$0x1]  ;;  %v1082_v58 = vld [vmem:[#allocation2 + $0x4] sm:$0x1] }
 0x202   : > { %v1083_v59 = vld [vmem:[#allocation2 + $0x5] sm:$0x1]  ;;  %944 = vst.msk [vmem:[#allocation2 + $0x8] sm:$0xff] %vm942_vm9, %v936_v51  ;;  %v1079_v60 = vmax.f32 %v1077_v55, %v1078_v57  ;;  %v1087_v62 = vld [vmem:[#allocation2 + $0x6] sm:$0x1] }
 0x203   : > { %v1084_v61 = vmax.f32 %v1082_v58, %v1083_v59  ;;  %v1088_v63 = vld [vmem:[#allocation2 + $0x7] sm:$0x1]  ;;  %v1074_v0 = vmax.f32 %v1073_v56, 0.0  ;;  %v990_v2 = vpop.permute.xlu0 %989  ;;  %v949_v3 = vpop.permute.xlu1 %948 }
 0x204   : > { %v1089_v1 = vmax.f32 %v1087_v62, %v1088_v63  ;;  %v1080_v4 = vmax.f32 %v1079_v60, 0.0  ;;  %957 = vst.msk [vmem:[#allocation2 + $0x8] sm:$0xff] %vm955_vm10, %v949_v3  ;;  %v2244_v3 = vld [vmem:[%s3588_s3 + $0x3a8] sm:$0xff] }
 0x205   : > { %v1085_v5 = vmax.f32 %v1084_v61, 0.0  ;;  %1076 = vst.msk [vmem:[#allocation3] sm:$0x1] %vm1075_vm2, %v1074_v0  ;;  %v2245_v0 = vld [vmem:[%s3588_s3 + $0x3b0] sm:$0xff] }
 0x206   : > { %v1090_v6 = vmax.f32 %v1089_v1, 0.0  ;;  %1081 = vst.msk [vmem:[#allocation3 + $0x1] sm:$0x1] %vm1075_vm2, %v1080_v4 }
 0x207   : > { %1086 = vst.msk [vmem:[#allocation3 + $0x2] sm:$0x1] %vm1075_vm2, %v1085_v5  ;;  %v1009_v7 = vpop.permute.xlu0 %1008  ;;  %v988_v8 = vpop.permute.xlu1 %987  ;;  %v2213_v5 = vld [vmem:[%s3588_s3 + $0x2b8] sm:$0xff] }
 0x208   : > { %1091 = vst.msk [vmem:[#allocation3 + $0x3] sm:$0x1] %vm1075_vm2, %v1090_v6  ;;  %v997_v9 = vsel %vm995_vm11, %v988_v8, %v990_v2  ;;  %v2214_v2 = vld [vmem:[%s3588_s3 + $0x2c0] sm:$0xff]  ;;  %v2242_v8 = vld [vmem:[%s3588_s3 + $0x398] sm:$0xff] }
 0x209   : > { %1004 = vst.msk [vmem:[#allocation2 + $0x8] sm:$0xff] %vm1002_vm12, %v997_v9  ;;  %v2243_v6 = vld [vmem:[%s3588_s3 + $0x3a0] sm:$0xff]  ;;  %v2211_v9 = vld [vmem:[%s3588_s3 + $0x2a8] sm:$0xff] }
 0x20a   : > { %1017 = vst.msk [vmem:[#allocation2 + $0x8] sm:$0xff] %vm1015_vm13, %v1009_v7  ;;  %v2212_v7 = vld [vmem:[%s3588_s3 + $0x2b0] sm:$0xff] }
 0x20b   : > { %v1035_v10 = vpop.permute.xlu0 %1034  ;;  %v1022_v11 = vpop.permute.xlu1 %1021 }
 0x20c   : > { %1030 = vst.msk [vmem:[#allocation2 + $0x8] sm:$0xff] %vm1028_vm14, %v1022_v11  ;;  %v2210_v11 = vld [vmem:[%s3588_s3 + $0x2a0] sm:$0xff] }
 0x20d   : > { %1043 = vst.msk [vmem:[#allocation2 + $0x8] sm:$0xff] %vm1041_vm15, %v1035_v10  ;;  %v2241_v10 = vld [vmem:[%s3588_s3 + $0x390] sm:$0xff] }
 0x20f   : > { %v899_v12 = vpop.permute.xlu0 %898  ;;  %v1048_v13 = vpop.permute.xlu1 %1047 }
 0x210   : > { %906 = vst.msk [vmem:[#allocation2 + $0x10] sm:$0xff] %vm903_vm6, %v899_v12  ;;  %v2240_v12 = vld [vmem:[%s3588_s3 + $0x388] sm:$0xff]  ;;  %vm1698_vm6 = vcmask 490816  }
 0x211   : > { %1056 = vst.msk [vmem:[#allocation2 + $0x8] sm:$0xff] %vm1054_vm0, %v1048_v13  ;;  %v2209_v13 = vld [vmem:[%s3588_s3 + $0x298] sm:$0xff] }
 0x213   : > { %v925_v14 = vpop.permute.xlu0 %924  ;;  %v912_v15 = vpop.permute.xlu1 %911 }
 0x214   : > { %919 = vst.msk [vmem:[#allocation2 + $0x10] sm:$0xff] %vm916_vm7, %v912_v15  ;;  %v2208_v15 = vld [vmem:[%s3588_s3 + $0x290] sm:$0xff]  ;;  %vm1714_vm7 = vcmask 654816  }
 0x215   : > { %932 = vst.msk [vmem:[#allocation2 + $0x10] sm:$0xff] %vm929_vm8, %v925_v14  ;;  %v2239_v14 = vld [vmem:[%s3588_s3 + $0x380] sm:$0xff]  ;;  %vm2482_vm8 = vmmov 0  }
 0x217   : > { %v951_v16 = vpop.permute.xlu0 %950  ;;  %v938_v17 = vpop.permute.xlu1 %937 }
 0x218   : > { %945 = vst.msk [vmem:[#allocation2 + $0x10] sm:$0xff] %vm942_vm9, %v938_v17  ;;  %v2207_v17 = vld [vmem:[%s3588_s3 + $0x288] sm:$0xff]  ;;  %vm3453_vm9 = vcmp.lt.s32.totalorder %v856_v20, 80 }
 0x219   : > { %958 = vst.msk [vmem:[#allocation2 + $0x10] sm:$0xff] %vm955_vm10, %v951_v16  ;;  %v2238_v16 = vld [vmem:[%s3588_s3 + $0x378] sm:$0xff]  ;;  %vm3513_vm10 = vcmp.ge.s32.totalorder %v856_v20, 80 }
 0x21b   : > { %v994_v18 = vpop.permute.xlu0 %993  ;;  %v992_v19 = vpop.permute.xlu1 %991 }
 0x21c   : > { %v998_v22 = vsel %vm995_vm11, %v992_v19, %v994_v18  ;;  %v2237_v18 = vld [vmem:[%s3588_s3 + $0x370] sm:$0xff]  ;;  %v2206_v19 = vld [vmem:[%s3588_s3 + $0x280] sm:$0xff] }
 0x21d   : > { %1005 = vst.msk [vmem:[#allocation2 + $0x10] sm:$0xff] %vm1002_vm12, %v998_v22  ;;  %v2236_v22 = vld [vmem:[%s3588_s3 + $0x368] sm:$0xff]  ;;  %vm3523_vm12 = vcmp.ge.s32.totalorder %v856_v20, 32 }
 0x21f   : > { %v1024_v23 = vpop.permute.xlu0 %1023  ;;  %v1011_v24 = vpop.permute.xlu1 %1010 }
 0x220   : > { %1018 = vst.msk [vmem:[#allocation2 + $0x10] sm:$0xff] %vm1015_vm13, %v1011_v24  ;;  %v2235_v24 = vld [vmem:[%s3588_s3 + $0x360] sm:$0xff]  ;;  %vm3528_vm13 = vcmp.lt.s32.totalorder %v856_v20, 112 }
 0x221   : > { %1031 = vst.msk [vmem:[#allocation2 + $0x10] sm:$0xff] %vm1028_vm14, %v1024_v23  ;;  %v2205_v23 = vld [vmem:[%s3588_s3 + $0x278] sm:$0xff]  ;;  %vm1747_vm14 = vcmask 654336  }
 0x223   : > { %v1050_v25 = vpop.permute.xlu0 %1049  ;;  %v1037_v27 = vpop.permute.xlu1 %1036 }
 0x224   : > { %1044 = vst.msk [vmem:[#allocation2 + $0x10] sm:$0xff] %vm1041_vm15, %v1037_v27  ;;  %v2234_v27 = vld [vmem:[%s3588_s3 + $0x358] sm:$0xff]  ;;  %vm1805_vm15 = vcmp.ge.s32.totalorder %v856_v20, 112 }
 0x225   : > { %1057 = vst.msk [vmem:[#allocation2 + $0x10] sm:$0xff] %vm1054_vm0, %v1050_v25  ;;  %v2204_v25 = vld [vmem:[%s3588_s3 + $0x270] sm:$0xff]  ;;  %vm1806_vm0 = vcmp.lt.s32.totalorder %v856_v20, 192 }
 0x227   : > { %v1061_v28 = vpop.permute.xlu0 %1060  ;;  %v1063_v29 = vpop.permute.xlu1 %1062 }
 0x228   : > { %1069 = vst.msk [vmem:[#allocation2 + $0x8] sm:$0xff] %vm1067_vm1, %v1061_v28  ;;  %1070 = vst.msk [vmem:[#allocation2 + $0x10] sm:$0xff] %vm1067_vm1, %v1063_v29  ;;  %v2203_v28 = vld [vmem:[%s3588_s3 + $0x268] sm:$0xff]  ;;  %v2233_v29 = vld [vmem:[%s3588_s3 + $0x350] sm:$0xff] }
 0x22f   : > { %v1092_v30 = vld [vmem:[#allocation2 + $0x8] sm:$0x1]  ;;  %v1093_v31 = vld [vmem:[#allocation2 + $0x9] sm:$0x1]  ;;  %v1097_v32 = vld [vmem:[#allocation2 + $0xa] sm:$0x1] }
 0x230   : > { %v1094_v33 = vmax.f32 %v1092_v30, %v1093_v31  ;;  %v1098_v35 = vld [vmem:[#allocation2 + $0xb] sm:$0x1]  ;;  %v1102_v36 = vld [vmem:[#allocation2 + $0xc] sm:$0x1]  ;;  %v1103_v38 = vld [vmem:[#allocation2 + $0xd] sm:$0x1] }
 0x231   : > { %v1099_v39 = vmax.f32 %v1097_v32, %v1098_v35  ;;  %v1104_v40 = vmax.f32 %v1102_v36, %v1103_v38  ;;  %v1107_v41 = vld [vmem:[#allocation2 + $0xe] sm:$0x1]  ;;  %v1108_v42 = vld [vmem:[#allocation2 + $0xf] sm:$0x1]  ;;  %v1112_v43 = vld [vmem:[#allocation2 + $0x10] sm:$0x1] }
 0x232   : > { %v1095_v44 = vmax.f32 %v1094_v33, 0.0  ;;  %v1109_v45 = vmax.f32 %v1107_v41, %v1108_v42  ;;  %v1113_v46 = vld [vmem:[#allocation2 + $0x11] sm:$0x1]  ;;  %v1117_v47 = vld [vmem:[#allocation2 + $0x12] sm:$0x1]  ;;  %v2202_v30 = vld [vmem:[%s3588_s3 + $0x260] sm:$0xff] }
 0x233   : > { %v1100_v48 = vmax.f32 %v1099_v39, 0.0  ;;  %v1105_v49 = vmax.f32 %v1104_v40, 0.0  ;;  %v1114_v50 = vmax.f32 %v1112_v43, %v1113_v46  ;;  %v1118_v51 = vld [vmem:[#allocation2 + $0x13] sm:$0x1]  ;;  %v1122_v52 = vld [vmem:[#allocation2 + $0x14] sm:$0x1] }
 0x234   : > { %1096 = vst.msk [vmem:[#allocation3 + $0x4] sm:$0x1] %vm1075_vm2, %v1095_v44  ;;  %v1110_v53 = vmax.f32 %v1109_v45, 0.0  ;;  %v1119_v54 = vmax.f32 %v1117_v47, %v1118_v51  ;;  %v1123_v55 = vld [vmem:[#allocation2 + $0x15] sm:$0x1]  ;;  %v2232_v31 = vld [vmem:[%s3588_s3 + $0x348] sm:$0xff] }
 0x235   : > { %v1127_v56 = vld [vmem:[#allocation2 + $0x16] sm:$0x1]  ;;  %1101 = vst.msk [vmem:[#allocation3 + $0x5] sm:$0x1] %vm1075_vm2, %v1100_v48  ;;  %1106 = vst.msk [vmem:[#allocation3 + $0x6] sm:$0x1] %vm1075_vm2, %v1105_v49  ;;  %v1124_v58 = vmax.f32 %v1122_v52, %v1123_v55 }
 0x236   : > { %v1115_v57 = vmax.f32 %v1114_v50, 0.0  ;;  %v1128_v59 = vld [vmem:[#allocation2 + $0x17] sm:$0x1]  ;;  %1111 = vst.msk [vmem:[#allocation3 + $0x7] sm:$0x1] %vm1075_vm2, %v1110_v53  ;;  %v1120_v60 = vmax.f32 %v1119_v54, 0.0 }
 0x237   : > { %v1129_v61 = vmax.f32 %v1127_v56, %v1128_v59  ;;  %v1125_v62 = vmax.f32 %v1124_v58, 0.0  ;;  %v2201_v32 = vld [vmem:[%s3588_s3 + $0x258] sm:$0xff]  ;;  %v2231_v33 = vld [vmem:[%s3588_s3 + $0x340] sm:$0xff]  ;;  %v2200_v35 = vld [vmem:[%s3588_s3 + $0x250] sm:$0xff] }
 0x238   : > { %1116 = vst.msk [vmem:[#allocation3 + $0x8] sm:$0x1] %vm1075_vm2, %v1115_v57  ;;  %1121 = vst.msk [vmem:[#allocation3 + $0x9] sm:$0x1] %vm1075_vm2, %v1120_v60  ;;  %v2230_v36 = vld [vmem:[%s3588_s3 + $0x338] sm:$0xff]  ;;  %v2199_v38 = vld [vmem:[%s3588_s3 + $0x248] sm:$0xff] }
 0x239   : > { %v1130_v63 = vmax.f32 %v1129_v61, 0.0  ;;  %1126 = vst.msk [vmem:[#allocation3 + $0xa] sm:$0x1] %vm1075_vm2, %v1125_v62  ;;  %v2229_v39 = vld [vmem:[%s3588_s3 + $0x330] sm:$0xff]  ;;  %v2198_v40 = vld [vmem:[%s3588_s3 + $0x240] sm:$0xff]  ;;  %v2228_v41 = vld [vmem:[%s3588_s3 + $0x328] sm:$0xff] }
 0x23a   : > { %v2197_v42 = vld [vmem:[%s3588_s3 + $0x238] sm:$0xff]  ;;  %v2227_v43 = vld [vmem:[%s3588_s3 + $0x320] sm:$0xff]  ;;  %v2196_v44 = vld [vmem:[%s3588_s3 + $0x230] sm:$0xff] }
 0x23b   : > { %1131 = vst.msk [vmem:[#allocation3 + $0xb] sm:$0x1] %vm1075_vm2, %v1130_v63  ;;  %v2226_v45 = vld [vmem:[%s3588_s3 + $0x318] sm:$0xff]  ;;  %v2195_v46 = vld [vmem:[%s3588_s3 + $0x228] sm:$0xff]  ;;  %v2225_v47 = vld [vmem:[%s3588_s3 + $0x310] sm:$0xff]  ;;  %vm1802_vm2 = vcmask 916480  }
 0x23c   : > { %v2194_v48 = vld [vmem:[%s3588_s3 + $0x220] sm:$0xff]  ;;  %v2224_v49 = vld [vmem:[%s3588_s3 + $0x308] sm:$0xff]  ;;  %v2193_v50 = vld [vmem:[%s3588_s3 + $0x218] sm:$0xff] }
 0x23d   : > { %v1132_v1 = vld [vmem:[#allocation3] sm:$0xff]  ;;  %v2223_v51 = vld [vmem:[%s3588_s3 + $0x300] sm:$0xff]  ;;  %v2192_v52 = vld [vmem:[%s3588_s3 + $0x210] sm:$0xff] }
 0x23e   : > { %2185 = vmatmul.mubr.msk.f32.vlgmr.msra.gmra.mxu0 %vm1195_vm3, %v1132_v1  ;;  %v2222_v53 = vld [vmem:[%s3588_s3 + $0x2f8] sm:$0xff]  ;;  %v2191_v54 = vld [vmem:[%s3588_s3 + $0x208] sm:$0xff]  ;;  %v2221_v55 = vld [vmem:[%s3588_s3 + $0x2f0] sm:$0xff] }
 0x23f   : > { %v1163_v4 = vld [vmem:[#allocation3 + $0x1] sm:$0xff]  ;;  %1490 = vmatpush1.msra.mxu0 %v2245_v0  ;;  %v2220_v57 = vld [vmem:[%s3588_s3 + $0x2e8] sm:$0xff]  ;;  %v2188_v60 = vld [vmem:[%s3588_s3 + $0x1f0] sm:$0xff]  ;;  %1551 = vmatprep.mubr.f32.mxu0 %v2469_v21 }
 0x240   : > { %2184 = vmatmul.mubr.msk.f32.vlgmr.msra.gmra.mxu1 %vm1195_vm3, %v1163_v4  ;;  %1491 = vmatprep.subr.mxu0 %v2244_v3  ;;  %v2190_v56 = vld [vmem:[%s3588_s3 + $0x200] sm:$0xff]  ;;  %v2189_v58 = vld [vmem:[%s3588_s3 + $0x1f8] sm:$0xff]  ;;  %v2187_v62 = vld [vmem:[%s3588_s3 + $0x1e8] sm:$0xff] }
 0x241   : > { %1382 = vmatpush1.msra.mxu1 %v2214_v2  ;;  %1492 = vmatpush1.msra.mxu0 %v2243_v6  ;;  %v2219_v59 = vld [vmem:[%s3588_s3 + $0x2e0] sm:$0xff]  ;;  %v2218_v61 = vld [vmem:[%s3588_s3 + $0x2d8] sm:$0xff]  ;;  %v2217_v0 = vld [vmem:[%s3588_s3 + $0x2d0] sm:$0xff] }
 0x242   : > { %1383 = vmatprep.subr.mxu1 %v2213_v5  ;;  %1493 = vmatprep.subr.mxu0 %v2242_v8  ;;  %v2186_v63 = vld [vmem:[%s3588_s3 + $0x1e0] sm:$0xff]  ;;  %v2277_v1 = vld [vmem:[%s3588_s3 + $0x4a8] sm:$0xff]  ;;  %v2275_v5 = vld [vmem:[%s3588_s3 + $0x498] sm:$0xff] }
 0x243   : > { %1384 = vmatpush1.msra.mxu1 %v2212_v7  ;;  %1494 = vmatpush1.msra.mxu0 %v2241_v10  ;;  %v1344_v2 = vld [vmem:[#allocation3 + $0x2] sm:$0xff]  ;;  %v2274_v6 = vld [vmem:[%s3588_s3 + $0x490] sm:$0xff]  ;;  %v2273_v7 = vld [vmem:[%s3588_s3 + $0x488] sm:$0xff] }
 0x244   : > { %1385 = vmatprep.subr.mxu1 %v2211_v9  ;;  %1495 = vmatprep.subr.mxu0 %v2240_v12  ;;  %v2276_v3 = vld [vmem:[%s3588_s3 + $0x4a0] sm:$0xff]  ;;  %v2271_v9 = vld [vmem:[%s3588_s3 + $0x478] sm:$0xff]  ;;  %v2270_v10 = vld [vmem:[%s3588_s3 + $0x470] sm:$0xff] }
 0x245   : > { %1386 = vmatpush1.msra.mxu1 %v2210_v11  ;;  %1496 = vmatpush1.msra.mxu0 %v2239_v14  ;;  %v1452_v4 = vld [vmem:[#allocation3 + $0x3] sm:$0xff]  ;;  %v2269_v11 = vld [vmem:[%s3588_s3 + $0x468] sm:$0xff]  ;;  %v2266_v14 = vld [vmem:[%s3588_s3 + $0x450] sm:$0xff] }
 0x246   : > { %1387 = vmatprep.subr.mxu1 %v2209_v13  ;;  %1497 = vmatprep.subr.mxu0 %v2238_v16  ;;  %v2272_v8 = vld [vmem:[%s3588_s3 + $0x480] sm:$0xff]  ;;  %v2267_v13 = vld [vmem:[%s3588_s3 + $0x458] sm:$0xff] }
 0x247   : > { %1388 = vmatpush1.msra.mxu1 %v2208_v15  ;;  %1498 = vmatpush1.msra.mxu0 %v2237_v18  ;;  %v2268_v12 = vld [vmem:[%s3588_s3 + $0x460] sm:$0xff]  ;;  %v2265_v15 = vld [vmem:[%s3588_s3 + $0x448] sm:$0xff]  ;;  %v2262_v18 = vld [vmem:[%s3588_s3 + $0x430] sm:$0xff] }
 0x248   : > { %1389 = vmatprep.subr.mxu1 %v2207_v17  ;;  %1499 = vmatprep.subr.mxu0 %v2236_v22  ;;  %v2264_v16 = vld [vmem:[%s3588_s3 + $0x440] sm:$0xff]  ;;  %v2263_v17 = vld [vmem:[%s3588_s3 + $0x438] sm:$0xff] }
 0x249   : > { %1390 = vmatpush1.msra.mxu1 %v2206_v19  ;;  %1500 = vmatpush1.msra.mxu0 %v2235_v24  ;;  %v2261_v19 = vld [vmem:[%s3588_s3 + $0x428] sm:$0xff]  ;;  %v2260_v22 = vld [vmem:[%s3588_s3 + $0x420] sm:$0xff]  ;;  %v2258_v24 = vld [vmem:[%s3588_s3 + $0x410] sm:$0xff] }
 0x24a   : > { %1391 = vmatprep.subr.mxu1 %v2205_v23  ;;  %1501 = vmatprep.subr.mxu0 %v2234_v27  ;;  %v2259_v23 = vld [vmem:[%s3588_s3 + $0x418] sm:$0xff]  ;;  %v2256_v27 = vld [vmem:[%s3588_s3 + $0x400] sm:$0xff] }
 0x24b   : > { %1392 = vmatpush1.msra.mxu1 %v2204_v25  ;;  %1502 = vmatpush1.msra.mxu0 %v2233_v29  ;;  %v2257_v25 = vld [vmem:[%s3588_s3 + $0x408] sm:$0xff]  ;;  %v2254_v29 = vld [vmem:[%s3588_s3 + $0x3f0] sm:$0xff] }
 0x24c   : > { %1393 = vmatprep.subr.mxu1 %v2203_v28  ;;  %1503 = vmatprep.subr.mxu0 %v2232_v31  ;;  %v2255_v28 = vld [vmem:[%s3588_s3 + $0x3f8] sm:$0xff]  ;;  %v2252_v31 = vld [vmem:[%s3588_s3 + $0x3e0] sm:$0xff] }
 0x24d   : > { %1394 = vmatpush1.msra.mxu1 %v2202_v30  ;;  %1504 = vmatpush1.msra.mxu0 %v2231_v33  ;;  %v2253_v30 = vld [vmem:[%s3588_s3 + $0x3e8] sm:$0xff]  ;;  %v2250_v33 = vld [vmem:[%s3588_s3 + $0x3d0] sm:$0xff] }
 0x24e   : > { %1395 = vmatprep.subr.mxu1 %v2201_v32  ;;  %1505 = vmatprep.subr.mxu0 %v2230_v36  ;;  %v2251_v32 = vld [vmem:[%s3588_s3 + $0x3d8] sm:$0xff]  ;;  %v2248_v36 = vld [vmem:[%s3588_s3 + $0x3c0] sm:$0xff] }
 0x24f   : > { %1396 = vmatpush1.msra.mxu1 %v2200_v35  ;;  %1506 = vmatpush1.msra.mxu0 %v2229_v39  ;;  %v2249_v35 = vld [vmem:[%s3588_s3 + $0x3c8] sm:$0xff] }
 0x250   : > { %1397 = vmatprep.subr.mxu1 %v2199_v38  ;;  %1507 = vmatprep.subr.mxu0 %v2228_v41  ;;  %v1560_v38 = vld [vmem:[#allocation3 + $0x4] sm:$0xff] }
 0x251   : > { %1398 = vmatpush1.msra.mxu1 %v2198_v40  ;;  %1508 = vmatpush1.msra.mxu0 %v2227_v43 }
 0x252   : > { %1399 = vmatprep.subr.mxu1 %v2197_v42  ;;  %1509 = vmatprep.subr.mxu0 %v2226_v45 }
 0x253   : > { %1400 = vmatpush1.msra.mxu1 %v2196_v44  ;;  %1510 = vmatpush1.msra.mxu0 %v2225_v47 }
 0x254   : > { %1401 = vmatprep.subr.mxu1 %v2195_v46  ;;  %1511 = vmatprep.subr.mxu0 %v2224_v49  ;;  %v1668_v49 = vld [vmem:[%s3589_s4] sm:$0x3] }
 0x255   : > { %1402 = vmatpush1.msra.mxu1 %v2194_v48  ;;  %1512 = vmatpush1.msra.mxu0 %v2223_v51 }
 0x256   : > { %1403 = vmatprep.subr.mxu1 %v2193_v50  ;;  %1513 = vmatprep.subr.mxu0 %v2222_v53 }
 0x257   : > { %1404 = vmatpush1.msra.mxu1 %v2192_v52  ;;  %1514 = vmatpush1.msra.mxu0 %v2221_v55  ;;  %v1673_v52 = vrot.slane %v1668_v49, %v2785_v34 }
 0x258   : > { %1405 = vmatprep.subr.mxu1 %v2191_v54  ;;  %1515 = vmatprep.subr.mxu0 %v2220_v57  ;;  %v1677_v57 = vrot.slane %v1668_v49, %v2791_v37 }
 0x259   : > { %1406 = vmatpush1.msra.mxu1 %v2190_v56  ;;  %1516 = vmatpush1.msra.mxu0 %v2219_v59 }
 0x25a   : > { %1407 = vmatprep.subr.mxu1 %v2189_v58  ;;  %1517 = vmatprep.subr.mxu0 %v2218_v61 }
 0x25b   : > { %1408 = vmatpush1.msra.mxu1 %v2188_v60  ;;  %1443 = vmatprep.mubr.f32.mxu1 %v2469_v21 }
 0x25c   : > { %1409 = vmatprep.subr.mxu1 %v2187_v62  ;;  %1518 = vmatpush1.msra.mxu0 %v2217_v0 }
 0x25d   : > { %1410 = vmatpush1.msra.mxu1 %v2186_v63  ;;  %2247 = vmatmul.mubr.msk.f32.vlgmr.msra.gmra.mxu0 %vm1195_vm3, %v1452_v4  ;;  %v1825_v4 = vld [vmem:[%s3590_s5 + $0x78] sm:$0xff] }
 0x25e   : > { %2216 = vmatmul.mubr.msk.f32.vlgmr.msra.gmra.mxu1 %vm1195_vm3, %v1344_v2  ;;  %1597 = vmatprep.subr.mxu1 %v2277_v1 }
 0x25f   : > { %1598 = vmatpush1.msra.mxu1 %v2276_v3  ;;  %1659 = vmatprep.mubr.f32.mxu1 %v2469_v21  ;;  %v1841_v3 = vld [vmem:[%s3590_s5 + $0xf8] sm:$0xff] }
 0x260   : > { %1599 = vmatprep.subr.mxu1 %v2275_v5  ;;  %v1840_v5 = vld [vmem:[%s3590_s5 + $0xf0] sm:$0xff]  ;;  %2284 = vmatprep.subr.mxu0 %v1841_v3 }
 0x261   : > { %1600 = vmatpush1.msra.mxu1 %v2274_v6  ;;  %v1824_v6 = vld [vmem:[%s3590_s5 + $0x70] sm:$0xff]  ;;  %2285 = vmatpush3.msra.mxu0 %v1825_v4 }
 0x262   : > { %1601 = vmatprep.subr.mxu1 %v2273_v7  ;;  %v1839_v7 = vld [vmem:[%s3590_s5 + $0xe8] sm:$0xff]  ;;  %2286 = vmatprep.subr.mxu0 %v1840_v5 }
 0x263   : > { %1602 = vmatpush1.msra.mxu1 %v2272_v8  ;;  %v1823_v8 = vld [vmem:[%s3590_s5 + $0x68] sm:$0xff]  ;;  %2287 = vmatpush3.msra.mxu0 %v1824_v6  ;;  %v1828_v6 = vld [vmem:[%s3590_s5 + $0x90] sm:$0xff] }
 0x264   : > { %1603 = vmatprep.subr.mxu1 %v2271_v9  ;;  %v1838_v9 = vld [vmem:[%s3590_s5 + $0xe0] sm:$0xff]  ;;  %2288 = vmatprep.subr.mxu0 %v1839_v7  ;;  %v1844_v7 = vld [vmem:[%s3590_s5 + $0x110] sm:$0xff] }
 0x265   : > { %1604 = vmatpush1.msra.mxu1 %v2270_v10  ;;  %v1822_v10 = vld [vmem:[%s3590_s5 + $0x60] sm:$0xff]  ;;  %2289 = vmatpush3.msra.mxu0 %v1823_v8  ;;  %v1812_v8 = vld [vmem:[%s3590_s5 + $0x10] sm:$0xff] }
 0x266   : > { %1605 = vmatprep.subr.mxu1 %v2269_v11  ;;  %v1837_v11 = vld [vmem:[%s3590_s5 + $0xd8] sm:$0xff]  ;;  %2290 = vmatprep.subr.mxu0 %v1838_v9  ;;  %v1827_v9 = vld [vmem:[%s3590_s5 + $0x88] sm:$0xff] }
 0x267   : > { %1606 = vmatpush1.msra.mxu1 %v2268_v12  ;;  %v1821_v12 = vld [vmem:[%s3590_s5 + $0x58] sm:$0xff]  ;;  %2291 = vmatpush3.msra.mxu0 %v1822_v10  ;;  %v1843_v10 = vld [vmem:[%s3590_s5 + $0x108] sm:$0xff] }
 0x268   : > { %1607 = vmatprep.subr.mxu1 %v2267_v13  ;;  %v1836_v13 = vld [vmem:[%s3590_s5 + $0xd0] sm:$0xff]  ;;  %2292 = vmatprep.subr.mxu0 %v1837_v11  ;;  %v1811_v11 = vld [vmem:[%s3590_s5 + $0x8] sm:$0xff] }
 0x269   : > { %1608 = vmatpush1.msra.mxu1 %v2266_v14  ;;  %v1820_v14 = vld [vmem:[%s3590_s5 + $0x50] sm:$0xff]  ;;  %2293 = vmatpush3.msra.mxu0 %v1821_v12 }
 0x26a   : > { %1609 = vmatprep.subr.mxu1 %v2265_v15  ;;  %v1835_v15 = vld [vmem:[%s3590_s5 + $0xc8] sm:$0xff]  ;;  %2294 = vmatprep.subr.mxu0 %v1836_v13  ;;  %v1826_v13 = vld [vmem:[%s3590_s5 + $0x80] sm:$0xff] }
 0x26b   : > { %1610 = vmatpush1.msra.mxu1 %v2264_v16  ;;  %v1819_v16 = vld [vmem:[%s3590_s5 + $0x48] sm:$0xff]  ;;  %2295 = vmatpush3.msra.mxu0 %v1820_v14  ;;  %v1842_v14 = vld [vmem:[%s3590_s5 + $0x100] sm:$0xff] }
 0x26c   : > { %1611 = vmatprep.subr.mxu1 %v2263_v17  ;;  %v1834_v17 = vld [vmem:[%s3590_s5 + $0xc0] sm:$0xff]  ;;  %2296 = vmatprep.subr.mxu0 %v1835_v15 }
 0x26d   : > { %1612 = vmatpush1.msra.mxu1 %v2262_v18  ;;  %v1818_v18 = vld [vmem:[%s3590_s5 + $0x40] sm:$0xff]  ;;  %2297 = vmatpush3.msra.mxu0 %v1819_v16 }
 0x26e   : > { %1613 = vmatprep.subr.mxu1 %v2261_v19  ;;  %2298 = vmatprep.subr.mxu0 %v1834_v17  ;;  %v1810_v15 = vld [vmem:[%s3590_s5] sm:$0xff] }
 0x26f   : > { %1614 = vmatpush1.msra.mxu1 %v2260_v22  ;;  %2299 = vmatpush3.msra.mxu0 %v1818_v18 }
 0x270   : > { %1615 = vmatprep.subr.mxu1 %v2259_v23 }
 0x271   : > { %1616 = vmatpush1.msra.mxu1 %v2258_v24 }
 0x272   : > { %1617 = vmatprep.subr.mxu1 %v2257_v25 }
 0x273   : > { %1618 = vmatpush1.msra.mxu1 %v2256_v27  ;;  %v2481_v27 = vmov 1966171168  }
 0x274   : > { %1619 = vmatprep.subr.mxu1 %v2255_v28  ;;  %v1731_v28 = vunpack.c.l.s4 %v2481_v27 }
 0x275   : > { %1620 = vmatpush1.msra.mxu1 %v2254_v29  ;;  %v1833_v29 = vld [vmem:[%s3590_s5 + $0xb8] sm:$0xff] }
 0x276   : > { %1621 = vmatprep.subr.mxu1 %v2253_v30  ;;  %v1849_v30 = vld [vmem:[%s3590_s5 + $0x138] sm:$0xff]  ;;  %2300 = vmatprep.subr.mxu0 %v1833_v29 }
 0x277   : > { %1622 = vmatpush1.msra.mxu1 %v2252_v31  ;;  %v1732_v31 = vunpack.c.0.s8 %v1731_v28 }
 0x278   : > { %1623 = vmatprep.subr.mxu1 %v2251_v32  ;;  %v1817_v32 = vld [vmem:[%s3590_s5 + $0x38] sm:$0xff] }
 0x279   : > { %1624 = vmatpush1.msra.mxu1 %v2250_v33  ;;  %2301 = vmatpush3.msra.mxu0 %v1817_v32  ;;  %v1832_v33 = vld [vmem:[%s3590_s5 + $0xb0] sm:$0xff] }
 0x27a   : > { %1625 = vmatprep.subr.mxu1 %v2249_v35  ;;  %v1848_v35 = vld [vmem:[%s3590_s5 + $0x130] sm:$0xff]  ;;  %2302 = vmatprep.subr.mxu0 %v1832_v33 }
 0x27b   : > { %1626 = vmatpush1.msra.mxu1 %v2248_v36  ;;  %v1816_v36 = vld [vmem:[%s3590_s5 + $0x30] sm:$0xff] }
 0x27c   : > { %2278 = vmatmul.mubr.msk.f32.vlgmr.msra.gmra.mxu1 %vm1195_vm3, %v1560_v38  ;;  %2328 = vmatprep.subr.mxu1 %v2469_v21  ;;  %vm1778_vm3 = vmand %vm3523_vm12, %vm3528_vm13 }
 0x27d   : > { %2329 = vmatpush3.msra.mxu1 %v1849_v30  ;;  %2303 = vmatpush3.msra.mxu0 %v1816_v36 }
 0x27e   : > { %2330 = vmatprep.subr.mxu1 %v2469_v21  ;;  %2344 = vmatprep.mubr.msk.f32.mxu1 %vm2482_vm8, %v2469_v21 }
 0x27f   : > { %2331 = vmatpush3.msra.mxu1 %v1848_v35 }
 0x280   : > { %2332 = vmatprep.subr.mxu1 %v2469_v21 }
 0x2fe   : > { %v1339_v40 = vpop.f32.mrf.mxu0 }
 0x300   : > { %v1265_v39 = vpop.f32.mrf.mxu1  ;;  %v1341_v43 = vpop.f32.mrf.mxu0 }
 0x301   : > { %v1340_v44 = vadd.f32 %v1339_v40, %v1265_v39 }
 0x302   : > { %v1267_v41 = vpop.f32.mrf.mxu1 }
 0x303   : > { %v1342_v46 = vadd.f32 %v1341_v43, %v1267_v41  ;;  %v1735_v41 = vsub.s32 %v1732_v31, %v2782_v26 }
 0x31d   : > { %v1553_v48 = vpop.f32.mrf.mxu0 }
 0x31e   : > { %v1445_v42 = vpop.f32.mrf.mxu1 }
 0x31f   : > { %v1450_v47 = vadd.f32 %v1445_v42, %v1340_v44  ;;  %v1555_v53 = vpop.f32.mrf.mxu0 }
 0x320   : > { %v1447_v45 = vpop.f32.mrf.mxu1 }
 0x321   : > { %v1451_v50 = vadd.f32 %v1447_v45, %v1342_v46  ;;  %v1558_v51 = vadd.f32 %v1553_v48, %v1450_v47 }
 0x323   : > { %v1559_v55 = vadd.f32 %v1555_v53, %v1451_v50  ;;  %v1847_v53 = vld [vmem:[%s3590_s5 + $0x128] sm:$0xff] }
 0x324   : > { %2333 = vmatpush3.msra.mxu1 %v1847_v53 }
 0x325   : > { %2334 = vmatprep.subr.mxu1 %v2469_v21 }
 0x33c   : > { %v1661_v54 = vpop.f32.mrf.mxu1 }
 0x33d   : > { %v1666_v56 = vadd.f32 %v1661_v54, %v1558_v51 }
 0x33e   : > { %v1663_v58 = vpop.f32.mrf.mxu1 }
 0x33f   : > { %v1680_v59 = vadd.f32 %v1673_v52, %v1666_v56  ;;  %v1667_v60 = vadd.f32 %v1663_v58, %v1559_v55  ;;  %v1831_v52 = vld [vmem:[%s3590_s5 + $0xa8] sm:$0xff]  ;;  %v1830_v58 = vld [vmem:[%s3590_s5 + $0xa0] sm:$0xff] }
 0x340   : > { %2304 = vmatprep.subr.mxu0 %v1831_v52 }
 0x341   : > { %v1681_v61 = vadd.f32 %v1677_v57, %v1667_v60  ;;  %1683 = vrot.lane.b32.xlu0 %v1680_v59, %s2471_s17  ;;  %v1815_v57 = vld [vmem:[%s3590_s5 + $0x28] sm:$0xff] }
 0x342   : > { %2305 = vmatpush3.msra.mxu0 %v1815_v57 }
 0x343   : > { %1701 = vrot.lane.b32.xlu1 %v1681_v61, %s2471_s17  ;;  %2306 = vmatprep.subr.mxu0 %v1830_v58 }
 0x3b3   : > { %v1684_v62 = vpop.permute.xlu0 %1683 }
 0x3b4   : > { %v1686_v63 = vmax.f32 %v1680_v59, %v1684_v62  ;;  %v1814_v62 = vld [vmem:[%s3590_s5 + $0x20] sm:$0xff] }
 0x3b5   : > { %v1702_v0 = vpop.permute.xlu1 %1701  ;;  %2307 = vmatpush3.msra.mxu0 %v1814_v62 }
 0x3b6   : > { %1690 = vrot.lane.b32.xlu0 %v1686_v63, %s2471_s17  ;;  %1695 = vrot.lane.b32.xlu1 %v1686_v63, %s2473_s19  ;;  %1688 = vst.msk [vmem:[#allocation4] sm:$0xff] %vm1687_vm4, %v1686_v63  ;;  %v1704_v1 = vmax.f32 %v1680_v59, %v1702_v0  ;;  %v1705_v2 = vmax.f32 %v1681_v61, %v1702_v0  ;;  %v1846_v59 = vld [vmem:[%s3590_s5 + $0x120] sm:$0xff]  ;;  %v1829_v63 = vld [vmem:[%s3590_s5 + $0x98] sm:$0xff]  ;;  %vm1807_vm4 = vmand %vm1805_vm15, %vm1806_vm0  ;;  %s2034_s19 = scalar_lea.hbm %s3592_s7, %s2280_s22 }
 0x3b7   : > { %v1845_v0 = vld [vmem:[%s3590_s5 + $0x118] sm:$0xff]  ;;  %2335 = vmatpush3.msra.mxu1 %v1846_v59  ;;  %2308 = vmatprep.subr.mxu0 %v1829_v63 }
 0x3b8   : > { %2336 = vmatprep.subr.mxu1 %v2469_v21 }
 0x3b9   : > { %2337 = vmatpush3.msra.mxu1 %v1845_v0 }
 0x3ba   : > { %1710 = vrot.lane.b32.xlu1 %v1705_v2, %s3603_s13  ;;  %1708 = vrot.lane.b32.xlu0 %v1704_v1, %s3603_s13  ;;  %v1813_v2 = vld [vmem:[%s3590_s5 + $0x18] sm:$0xff]  ;;  %s2407_s13 = scalar_lea.vmem %s2037_s20, 16 }
 0x3bb   : > { %2309 = vmatpush3.msra.mxu0 %v1813_v2  ;;  %2338 = vmatprep.subr.mxu1 %v2469_v21  ;;  %p2408_p11 = scmp.ne.s32.totalorder %s2037_s20, %s2407_s13 }
 0x3bc   : > { %2310 = vmatprep.subr.mxu0 %v1828_v6  ;;  %2339 = vmatpush3.msra.mxu1 %v1844_v7 }
 0x3bd   : > { %2311 = vmatpush3.msra.mxu0 %v1812_v8  ;;  %2340 = vmatprep.subr.mxu1 %v2469_v21  ;;  %p2409_p12 = pnand %p2408_p11, %p2565_p5 }
 0x3be   : > { %2312 = vmatprep.subr.mxu0 %v1827_v9  ;;  %2341 = vmatpush3.msra.mxu1 %v1843_v10 }
 0x3bf   : > { %2313 = vmatpush3.msra.mxu0 %v1811_v11  ;;  %2342 = vmatprep.subr.mxu1 %v2469_v21  ;;  %p2410_p13 = pneg %p2409_p12 }
 0x3c0   : > { %2314 = vmatprep.subr.mxu0 %v1826_v13  ;;  %2343 = vmatpush3.msra.mxu1 %v1842_v14 }
 0x3c1   : > { %2315 = vmatpush3.msra.mxu0 %v1810_v15 }
 0x428   : > { %v1691_v19 = vpop.permute.xlu0 %1690  ;;  %v1696_v22 = vpop.permute.xlu1 %1695 }
 0x429   : > { %1694 = vst.msk [vmem:[#allocation4] sm:$0xff] %vm1693_vm5, %v1691_v19  ;;  %vm1866_vm5 = vcmask 523264  }
 0x42a   : > { %1699 = vst.msk [vmem:[#allocation4] sm:$0xff] %vm1698_vm6, %v1696_v22  ;;  %vm2009_vm6 = vcmask 73728  }
 0x42c   : > { %v1709_v23 = vpop.permute.xlu0 %1708  ;;  %v1711_v24 = vpop.permute.xlu1 %1710 }
 0x42d   : > { %v1712_v25 = vsel %vm995_vm11, %v1709_v23, %v1711_v24  ;;  %vm3518_vm11 = vcmp.lt.s32.totalorder %v856_v20, 160  ;;  %v1862_v20 = vsub.s32 2, %v2782_v26 }
 0x42e   : > { %1715 = vst.msk [vmem:[#allocation4] sm:$0xff] %vm1714_vm7, %v1712_v25  ;;  %vm1752_vm1 = vmand %vm3513_vm10, %vm3518_vm11 }
 0x435   : > { %v1780_v38 = vld [vmem:[#allocation4 + $0x6] sm:$0x1]  ;;  %v1781_v39 = vld [vmem:[#allocation4 + $0x7] sm:$0x1]  ;;  %v1725_v40 = vld [vmem:[#allocation4 + $0x2] sm:$0x1] }
 0x436   : > { %v1782_v42 = vmax.f32 %v1780_v38, %v1781_v39  ;;  %v1726_v43 = vld [vmem:[#allocation4 + $0x3] sm:$0x1]  ;;  %v1754_v44 = vld [vmem:[#allocation4 + $0x4] sm:$0x1]  ;;  %v1755_v45 = vld [vmem:[#allocation4 + $0x5] sm:$0x1] }
 0x437   : > { %v1727_v46 = vmax.f32 %v1725_v40, %v1726_v43  ;;  %v1756_v47 = vmax.f32 %v1754_v44, %v1755_v45  ;;  %v1716_v48 = vld [vmem:[#allocation4] sm:$0x1]  ;;  %v1717_v49 = vld [vmem:[#allocation4 + $0x1] sm:$0x1]  ;;  %v1850_v38 = vld [vmem:[%s3591_s6] sm:$0x1] }
 0x438   : > { %v1783_v50 = vmax.f32 %v1782_v42, 0.0  ;;  %v1718_v51 = vmax.f32 %v1716_v48, %v1717_v49 }
 0x439   : > { %v1728_v54 = vmax.f32 %v1727_v46, 0.0  ;;  %v1757_v55 = vmax.f32 %v1756_v47, 0.0 }
 0x43a   : > { %v1791_v60 = vrot.slane %v1783_v50, %v1735_v41  ;;  %v1719_v61 = vmax.f32 %v1718_v51, 0.0 }
 0x43b   : > { %v1736_v1 = vrot.slane %v1728_v54, %v1735_v41  ;;  %v1765_v5 = vrot.slane %v1757_v55, %v1735_v41 }
 0x43c   : > { %v1798_v3 = vrot.slane %v1791_v60, %v1735_v41  ;;  %1724 = vst.msk [vmem:[#allocation5] sm:$0x1] %vm3453_vm9, %v1719_v61 }
 0x43d   : > { %v1743_v4 = vrot.slane %v1736_v1, %v1735_v41  ;;  %v1772_v12 = vrot.slane %v1765_v5, %v1735_v41 }
 0x43e   : > { %1799 = vrot.lane.b32.xlu1 %v1798_v3, %s2483_s9  ;;  %s2486_s9 = smov [#allocation6]  }
 0x43f   : > { %1744 = vrot.lane.b32.xlu0 %v1743_v4, %s2484_s16  ;;  %s2411_s8 = sshll.u32 %s2486_s9, 4  ;;  %s2412_s8 = int_to_ptr.vmem [resolvable:$false] %s2411_s8 }
 0x440   : > { %s2413_s28 = scalar_lea.vmem %s2412_s8, 32  ;;  %p2414_p0 = scmp.lt.s32.totalorder %s2037_s20, %s2412_s8 }
 0x441   : > { %p2415_p1 = scmp.lt.s32.totalorder %s2413_s28, %s2407_s13 }
 0x443   : > { %1773 = vrot.lane.b32.xlu0 %v1772_v12, %s2485_s15  ;;  %p2416_p2 = por %p2415_p1, %p2414_p0 }
 0x445   : > { %p2417_p3 = pnand %p2416_p2, %p2410_p13 }
 0x4b0   : > { %v1800_v18 = vpop.permute.xlu1 %1799 }
 0x4b1   : > { %v1745_v22 = vpop.permute.xlu0 %1744  ;;  %v1801_v23 = vrot.slane %v1800_v18, 7 }
 0x4b2   : > { %v1746_v24 = vrot.slane %v1745_v22, 7 }
 0x4b3   : > { %v1803_v28 = vsel %vm1802_vm2, %v1801_v23, %v1800_v18 }
 0x4b4   : > { %v1748_v25 = vsel %vm1747_vm14, %v1746_v24, %v1745_v22 }
 0x4b5   : > { %v1774_v27 = vpop.permute.xlu0 %1773  ;;  %1753 = vst.msk [vmem:[#allocation5] sm:$0x3] %vm1752_vm1, %v1748_v25 }
 0x4b6   : > { %1779 = vst.msk [vmem:[#allocation5 + $0x1] sm:$0x1] %vm1778_vm3, %v1774_v27 }
 0x4b7   : > { %1808 = vst.msk [vmem:[#allocation5 + $0x1] sm:$0x3] %vm1807_vm4, %v1803_v28 }
 0x4be   : > { %v1809_v29 = vld [vmem:[#allocation5] sm:$0x7] }
 0x4bf   : > { %v1859_v30 = vrot.slane %v1809_v29, %v2791_v37  ;;  %v1863_v31 = vrot.slane %v1809_v29, %v1862_v20  ;;  %v1855_v32 = vrot.slane %v1809_v29, %v2785_v34 }
 0x4c1   : > { %1933 = vmatprep.mubr.f32.mxu0 %v1859_v30  ;;  %2345 = vmatmul.mubr.msk.f32.vlgmr.msra.gmra.mxu1 %vm1866_vm5, %v1863_v31 }
 0x4c2   : > { %1934 = vmatmul.mubr.f32.vlgmr.msra.gmra.mxu0 %v1855_v32 }
 0x581   : > { %v2005_v33 = vpop.f32.mrf.mxu1 }
 0x582   : > { %v2316_v35 = vpop.f32.mrf.mxu0 }
 0x583   : > { %v2346_v36 = vpop.f32.mrf.mxu1 }
 0x584   : > { %v2317_v39 = vpop.f32.mrf.mxu0 }
 0x585   : > { %v2318_v26 = vadd.f32 %v2317_v39, %v2316_v35 }
 0x587   : > { %v1936_v40 = vadd.f32 %v2318_v26, %v1850_v38 }
 0x589   : > { %v2006_v37 = vadd.f32 %v2005_v33, %v1936_v40 }
 0x58b   : > { %v2010_v41 = vsel %vm2009_vm6, %v2006_v37, -inf }
 0x58c   : > { %2011 = vmax.xlane.f32.xlu1 %v2010_v41 }
 0x615   : > { %v2012_v34 = vpop.xlane.xlu1 %2011 }
 0x616   : > { %v2013_v42 = vsub.f32 %v2006_v37, %v2012_v34 }
 0x618   : > { %v2014_v43 = vmul.f32 1.442695, %v2013_v42 }
 0x61a   : > { %2403 = vpow2.f32 %v2014_v43 }
 0x627   : > { %v2404_v44 = vpop.eup %2403 }
 0x628   : > { %v2016_v45 = vsel %vm2009_vm6, %v2404_v44, 0.0 }
 0x629   : > { %2017 = vadd.xlane.f32.xlu0 %v2016_v45 }
 0x6b2   : > { %v2018_v46 = vpop.xlane.xlu0 %2017 }
 0x6b3   : > { %2405 = vlog2.f32 %v2018_v46 }
 0x6c0   : > { %v2406_v47 = vpop.eup %2405 }
 0x6c1   : > { %v2020_v48 = vmul.f32 0.6931472, %v2406_v47 }
 0x6c3   : > { %v2021_v49 = vsub.f32 %v2013_v42, %v2020_v48 }
 0x6c5   : > { %2022 = vst.msk [vmem:[%s270_s29] sm:$0x1] %vm2009_vm6, %v2021_v49 }
 0x6c6   : > { %2420 = shalt.err (!%p2417_p3)
}
 0x6c7   : > { %s2421_s15 = scalar_lea.hbm %s2034_s19, 16  ;;  %s2425_s14 = scalar_lea.hbm %s3592_s7, 32 }
 0x6c8   : > { %p2422_p4 = scmp.ne.s32.totalorder %s2034_s19, %s2421_s15  ;;  %p2426_p9 = scmp.lt.s32.totalorder %s2034_s19, %s3592_s7 }
 0x6c9   : > { %p2427_p10 = scmp.lt.s32.totalorder %s2425_s14, %s2421_s15 }
 0x6ca   : > { %p2423_p7 = pnand %p2422_p4, %p2565_p5 }
 0x6cb   : > { %p2428_p11 = por %p2427_p10, %p2426_p9 }
 0x6cc   : > { %p2424_p8 = pneg %p2423_p7 }
 0x6ce   : > { %p2429_p12 = pnand %p2428_p11, %p2424_p8 }
 0x6d0   : > { %2432 = shalt.err (!%p2429_p12)
}
 0x6d1   : > { %2347 = dma.vmem_to_hbm [thread:$0]  (%p2565_p5), %s2037_s20, 16, %s2034_s19, %s2024_s23  }
 0x6d2 PF: > { %p2353_p13 = scmp.ge.s32.totalorder %s2467_s27, 2  ;;  %s2048_s21 = sand.u32 1, %s2455_s24  }
 0x6d3   : > { %s2049_s17 = scalar_lea.sflag [#allocation7], %s2048_s21 }
 0x6d4   : > { %p2350_p0 = pnand %p2353_p13, %p2569_p6 }
 0x6d6   : > { %p2351_p1 = pneg %p2350_p0 }
 0x6d8   : > { %2450 = dma.done.wait (%p2351_p1), %s2049_s17, 16  }
 0x6d9   : > { %2452 = vsyncadd (%p2351_p1), %s2049_s17, 4294967280  ;;  %p17_p2 = scmp.ge.s32.totalorder %s2552_s30, 4   ;;  %s3619_s24 = smov %s2459_s25 }
 0x6da   : > { %s3620_s25 = smov %s2463_s26  ;;  %s3621_s26 = smov %s2563_s10 }
 0x6db   : > { %s3622_s27 = smov %s2552_s30  ;;  %19 = sbr.rel (!%p17_p2) target bundleno = 3 (0x3), region = 91 }
 0x6e0   :  { %2053 = vsyncpa [#allocation7], 1 }
 0x6e1   :  { %2055 = vsyncpa [#allocation7 + $0x1], 1 }

</bundles_post_ra>
